<compile_context>
chip_gen: v7x
topology: tpu7x:2x2x1
jax: 0.10.0
libtpu: 0.0.40
codegen_flags: <defaults>
</compile_context>

<pallas_src>
import functools

import numpy as np
import jax
import jax.numpy as jnp
from jax.experimental import pallas as pl
from jax.experimental.pallas import tpu as pltpu

_K_LIVE_F32_TEMPS = 16  # conservative count of live slab-sized f32 temporaries


def _ceil_to(x, m):
    return ((x + m - 1) // m) * m


def _reflect_index(t, n):
    # PyTorch 'reflect' (no edge repeat) source index for padded position t in [-2, n+1].
    return int(n - 1 - abs(n - 1 - abs(t)))


def _horizontal_stencil_matrices(w):
    """Constant (W, W+2) matrices applied on the lane (W) axis via the MXU:
    center-select and 3-sum, with reflect-pad-2 baked into the edge columns."""
    mh_center = np.zeros((w, w + 2), dtype=np.float32)
    mh_box = np.zeros((w, w + 2), dtype=np.float32)
    for j in range(w + 2):
        mh_center[_reflect_index(j - 1, w), j] = 1.0
        for d in range(3):
            mh_box[_reflect_index(j - 2 + d, w), j] += 1.0
    return mh_center, mh_box


def _edge_loss_kernel(mc_ref, mb_ref, pre_ref, gt_ref, out_ref, acc_ref,
                      *, nc, tb, h, w):
    i = pl.program_id(0)

    @pl.when(i == 0)
    def _init():
        acc_ref[...] = jnp.zeros_like(acc_ref)

    mc = mc_ref[...]  # (W, W+2) center-select (reflect pad 1 horizontally)
    mb = mb_ref[...]  # (W, W+2) horizontal 3-sum (reflect pad 2 horizontally)

    def lap_abs_tanh(x_ref):
        x = x_ref[...].astype(jnp.float32)              # (tb, H, W), cast in-kernel
        x2 = x.reshape(tb * h, w)
        # Horizontal (lane axis) reflect-pad + stencil on the MXU.
        hc = jnp.dot(x2, mc, preferred_element_type=jnp.float32).reshape(tb, h, w + 2)
        hb = jnp.dot(x2, mb, preferred_element_type=jnp.float32).reshape(tb, h, w + 2)
        # Vertical (sublane axis) reflect-pad + 3-sum: sublane concats / adds only.
        cp = jnp.concatenate([hc[:, 1:2], hc, hc[:, h - 2:h - 1]], axis=1)        # (tb, H+2, W+2)
        bp = jnp.concatenate([hb[:, 2:3], hb[:, 1:2], hb,
                              hb[:, h - 2:h - 1], hb[:, h - 3:h - 2]], axis=1)    # (tb, H+4, W+2)
        box = bp[:, 0:h + 2] + bp[:, 1:h + 3] + bp[:, 2:h + 4]                    # (tb, H+2, W+2)
        # Laplacian [[-1,-1,-1],[-1,8,-1],[-1,-1,-1]]: 8*c - neighbors == 9*c - box.
        lap = 9.0 * cp - box
        return jnp.abs(jnp.tanh(lap))

    diff = jnp.abs(lap_abs_tanh(pre_ref) - lap_abs_tanh(gt_ref))  # (tb, H+2, W+2)

    if nc % tb != 0:  # ragged last channel block: mask in-kernel (no wrapper pad)
        valid = jnp.int32(nc) - i * tb
        ch = jax.lax.broadcasted_iota(jnp.int32, diff.shape, 0)
        diff = jnp.where(ch < valid, diff, 0.0)

    # Per-step reduce only folds the channel (outer) axis; no cross-lane reduce here.
    acc_ref[...] += jnp.sum(diff, axis=0)

    @pl.when(i == pl.num_programs(0) - 1)
    def _finalize():
        out_ref[...] = jnp.sum(acc_ref[...], keepdims=True)


def _vmem_budget_bytes():
    try:
        cap = int(pltpu.get_tpu_info().vmem_capacity_bytes)
    except Exception:
        cap = 64 * 1024 * 1024  # assume the smallest (v7x-like) VMEM if unknown
    vmem_limit = min(cap // 2, 64 * 1024 * 1024)   # 32 MiB on v7x, 64 MiB on v5e/v6e
    model_budget = (vmem_limit * 5) // 8           # headroom below the scoped limit
    return model_budget, vmem_limit


def _pick_block_channels(nc, h, w, in_itemsize, budget_bytes):
    """Channels per grid step from an explicit (8,128)-padded footprint model."""
    in_bytes = _ceil_to(h, 8) * _ceil_to(w, 128) * in_itemsize        # one input channel slab
    tmp_bytes = _ceil_to(h + 4, 8) * _ceil_to(w + 2, 128) * 4         # one f32 temp channel slab
    per_ch = 2 * 2 * in_bytes + _K_LIVE_F32_TEMPS * tmp_bytes         # 2 operands x 2 buffers + temps
    fixed = 2 * 2 * _ceil_to(w, 8) * _ceil_to(w + 2, 128) * 4         # 2 stencil matrices x 2 buffers
    fixed += _ceil_to(h + 2, 8) * _ceil_to(w + 2, 128) * 4            # accumulator scratch
    tb = (budget_bytes - fixed) // per_ch
    return int(max(1, min(tb, nc, 128)))


def edge_loss(pre, gt):
    """Equivalent of edge_loss(channels=C).forward(pre, gt) -> scalar L1 loss."""
    assert pre.shape == gt.shape
    N, C, H, W = pre.shape
    assert H >= 3 and W >= 3, "reflect padding of 2 needs H, W >= 3"

    nc = N * C
    pre_r = pre.reshape(nc, H, W)   # metadata-only reshape; native dtype, cast in kernel
    gt_r = gt.reshape(nc, H, W)

    budget, vmem_limit = _vmem_budget_bytes()
    tb = _pick_block_channels(nc, H, W, pre_r.dtype.itemsize, budget)
    num_blocks = pl.cdiv(nc, tb)

    mh_c, mh_b = _horizontal_stencil_matrices(W)
    mh_c = jnp.asarray(mh_c)
    mh_b = jnp.asarray(mh_b)

    kernel = functools.partial(_edge_loss_kernel, nc=nc, tb=tb, h=H, w=W)

    mat_spec = pl.BlockSpec((W, W + 2), lambda i: (0, 0))       # constant block -> DMA'd once
    img_spec = pl.BlockSpec((tb, H, W), lambda i: (i, 0, 0))

    total = pl.pallas_call(
        kernel,
        out_shape=jax.ShapeDtypeStruct((1, 1), jnp.float32),
        grid_spec=pltpu.PrefetchScalarGridSpec(
            num_scalar_prefetch=0,
            grid=(num_blocks,),
            in_specs=[mat_spec, mat_spec, img_spec, img_spec],
            out_specs=pl.BlockSpec((1, 1), lambda i: (0, 0)),
            scratch_shapes=[pltpu.VMEM((H + 2, W + 2), jnp.float32)],
        ),
        compiler_params=pltpu.CompilerParams(
            dimension_semantics=("arbitrary",),
            vmem_limit_bytes=int(vmem_limit),
        ),
    )(mh_c, mh_b, pre_r, gt_r)

    # conv2d output is (N, C, H+2, W+2); L1Loss is the mean over all its elements.
    count = float(N * C * (H + 2) * (W + 2))
    return total[0, 0] / count


def _reference_edge_loss(pre, gt):
    """Pure-JAX reference matching the PyTorch module semantics."""
    def lap_abs_tanh(x):
        xp = jnp.pad(x, ((0, 0), (0, 0), (2, 2), (2, 2)), mode="reflect")
        c = xp[:, :, 1:-1, 1:-1]
        nb = (xp[:, :, :-2, :-2] + xp[:, :, :-2, 1:-1] + xp[:, :, :-2, 2:]
              + xp[:, :, 1:-1, :-2] + xp[:, :, 1:-1, 2:]
              + xp[:, :, 2:, :-2] + xp[:, :, 2:, 1:-1] + xp[:, :, 2:, 2:])
        return jnp.abs(jnp.tanh(8.0 * c - nb))

    return jnp.mean(jnp.abs(lap_abs_tanh(pre) - lap_abs_tanh(gt)))


if __name__ == "__main__":
    key = jax.random.PRNGKey(0)
    k1, k2 = jax.random.split(key)
    # Small shapes consistent with the module (default channels=3).
    N, C, H, W = 2, 3, 16, 16
    pre = jax.random.normal(k1, (N, C, H, W), dtype=jnp.float32)
    gt = jax.random.normal(k2, (N, C, H, W), dtype=jnp.float32)

    loss = jax.block_until_ready(edge_loss(pre, gt))
    ref = jax.block_until_ready(_reference_edge_loss(pre, gt))
    assert jnp.allclose(loss, ref, rtol=1e-5, atol=1e-5), (loss, ref)

    print("KERNEL_OK")
</pallas_src>

<mosaic_0001>
module attributes {stable_mosaic.version = 11 : i64} {
  func.func @_edge_loss_kernel(%arg0: i32, %arg1: memref<16x18xf32, #tpu.memory_space<vmem>>, %arg2: memref<16x18xf32, #tpu.memory_space<vmem>>, %arg3: memref<6x16x16xf32, #tpu.memory_space<vmem>>, %arg4: memref<6x16x16xf32, #tpu.memory_space<vmem>>, %arg5: memref<1x1xf32, #tpu.memory_space<vmem>>, %arg6: memref<18x18xf32, #tpu.memory_space<vmem>>) attributes {dimension_semantics = [#tpu.dimension_semantics<arbitrary>], iteration_bounds = array<i64: 1>, scalar_prefetch = 0 : i64, scratch_operands = 1 : i64, tpu.core_type = #tpu.core_type<tc>, window_params = [{pipeline_mode = #tpu.pipeline_mode<synchronous>, transform_indices = @transform_0, window_bounds = array<i64: 16, 18>}, {pipeline_mode = #tpu.pipeline_mode<synchronous>, transform_indices = @transform_1, window_bounds = array<i64: 16, 18>}, {transform_indices = @transform_2, window_bounds = array<i64: 6, 16, 16>}, {transform_indices = @transform_3, window_bounds = array<i64: 6, 16, 16>}, {pipeline_mode = #tpu.pipeline_mode<synchronous>, transform_indices = @transform_4, window_bounds = array<i64: 1, 1>}]} {
    %c0_i32 = arith.constant 0 : i32
    %0 = arith.cmpi eq, %arg0, %c0_i32 : i32
    %1 = arith.extui %0 : i1 to i32
    %c0_i32_0 = arith.constant 0 : i32
    %2 = arith.cmpi ne, %1, %c0_i32_0 : i32
    scf.if %2 {
      %cst_22 = arith.constant 0.000000e+00 : f32
      %62 = vector.broadcast %cst_22 : f32 to vector<18x18xf32>
      %c0_23 = arith.constant 0 : index
      %c0_24 = arith.constant 0 : index
      %63 = vector.load %arg6[%c0_23, %c0_24] : memref<18x18xf32, #tpu.memory_space<vmem>>, vector<18x18xf32>
      tpu.vector_store %arg6[%c0_23, %c0_24], %62 {strides = array<i32>} : memref<18x18xf32, #tpu.memory_space<vmem>>, vector<18x18xf32>,
    } else {
    }
    %c0 = arith.constant 0 : index
    %c0_1 = arith.constant 0 : index
    %3 = vector.load %arg1[%c0, %c0_1] : memref<16x18xf32, #tpu.memory_space<vmem>>, vector<16x18xf32>
    %c0_2 = arith.constant 0 : index
    %c0_3 = arith.constant 0 : index
    %4 = vector.load %arg2[%c0_2, %c0_3] : memref<16x18xf32, #tpu.memory_space<vmem>>, vector<16x18xf32>
    %c0_4 = arith.constant 0 : index
    %c0_5 = arith.constant 0 : index
    %c0_6 = arith.constant 0 : index
    %5 = vector.load %arg3[%c0_4, %c0_5, %c0_6] : memref<6x16x16xf32, #tpu.memory_space<vmem>>, vector<6x16x16xf32>
    %6 = vector.shape_cast %5 : vector<6x16x16xf32> to vector<96x16xf32>
    %cst = arith.constant dense<0.000000e+00> : vector<96x18xf32>
    %7 = tpu.matmul %6, %3, %cst {dimension_numbers = #tpu.dot_dimension_numbers<[1], [0], [0], [1], [0, 0, 1, 1], [], []>} : vector<96x16xf32>, vector<16x18xf32>, vector<96x18xf32> -> vector<96x18xf32>
    %8 = vector.shape_cast %7 : vector<96x18xf32> to vector<6x16x18xf32>
    %cst_7 = arith.constant dense<0.000000e+00> : vector<96x18xf32>
    %9 = tpu.matmul %6, %4, %cst_7 {dimension_numbers = #tpu.dot_dimension_numbers<[1], [0], [0], [1], [0, 0, 1, 1], [], []>} : vector<96x16xf32>, vector<16x18xf32>, vector<96x18xf32> -> vector<96x18xf32>
    %10 = vector.shape_cast %9 : vector<96x18xf32> to vector<6x16x18xf32>
    %11 = vector.extract_strided_slice %8 {offsets = [0, 1, 0], sizes = [6, 1, 18], strides = [1, 1, 1]} : vector<6x16x18xf32> to vector<6x1x18xf32>
    %12 = vector.extract_strided_slice %8 {offsets = [0, 14, 0], sizes = [6, 1, 18], strides = [1, 1, 1]} : vector<6x16x18xf32> to vector<6x1x18xf32>
    %13 = tpu.concatenate %11, %8, %12 in 1 : vector<6x1x18xf32>, vector<6x16x18xf32>, vector<6x1x18xf32> -> vector<6x18x18xf32>
    %14 = vector.extract_strided_slice %10 {offsets = [0, 2, 0], sizes = [6, 1, 18], strides = [1, 1, 1]} : vector<6x16x18xf32> to vector<6x1x18xf32>
    %15 = vector.extract_strided_slice %10 {offsets = [0, 1, 0], sizes = [6, 1, 18], strides = [1, 1, 1]} : vector<6x16x18xf32> to vector<6x1x18xf32>
    %16 = vector.extract_strided_slice %10 {offsets = [0, 14, 0], sizes = [6, 1, 18], strides = [1, 1, 1]} : vector<6x16x18xf32> to vector<6x1x18xf32>
    %17 = vector.extract_strided_slice %10 {offsets = [0, 13, 0], sizes = [6, 1, 18], strides = [1, 1, 1]} : vector<6x16x18xf32> to vector<6x1x18xf32>
    %18 = tpu.concatenate %14, %15, %10, %16, %17 in 1 : vector<6x1x18xf32>, vector<6x1x18xf32>, vector<6x16x18xf32>, vector<6x1x18xf32>, vector<6x1x18xf32> -> vector<6x20x18xf32>
    %19 = vector.extract_strided_slice %18 {offsets = [0, 0, 0], sizes = [6, 18, 18], strides = [1, 1, 1]} : vector<6x20x18xf32> to vector<6x18x18xf32>
    %20 = vector.extract_strided_slice %18 {offsets = [0, 1, 0], sizes = [6, 18, 18], strides = [1, 1, 1]} : vector<6x20x18xf32> to vector<6x18x18xf32>
    %21 = arith.addf %19, %20 : vector<6x18x18xf32>
    %22 = vector.extract_strided_slice %18 {offsets = [0, 2, 0], sizes = [6, 18, 18], strides = [1, 1, 1]} : vector<6x20x18xf32> to vector<6x18x18xf32>
    %23 = arith.addf %21, %22 : vector<6x18x18xf32>
    %cst_8 = arith.constant 9.000000e+00 : f32
    %24 = vector.broadcast %cst_8 : f32 to vector<6x18x18xf32>
    %25 = arith.mulf %24, %13 : vector<6x18x18xf32>
    %26 = arith.subf %25, %23 : vector<6x18x18xf32>
    %27 = math.tanh %26 : vector<6x18x18xf32>
    %28 = math.absf %27 : vector<6x18x18xf32>
    %c0_9 = arith.constant 0 : index
    %c0_10 = arith.constant 0 : index
    %c0_11 = arith.constant 0 : index
    %29 = vector.load %arg4[%c0_9, %c0_10, %c0_11] : memref<6x16x16xf32, #tpu.memory_space<vmem>>, vector<6x16x16xf32>
    %30 = vector.shape_cast %29 : vector<6x16x16xf32> to vector<96x16xf32>
    %cst_12 = arith.constant dense<0.000000e+00> : vector<96x18xf32>
    %31 = tpu.matmul %30, %3, %cst_12 {dimension_numbers = #tpu.dot_dimension_numbers<[1], [0], [0], [1], [0, 0, 1, 1], [], []>} : vector<96x16xf32>, vector<16x18xf32>, vector<96x18xf32> -> vector<96x18xf32>
    %32 = vector.shape_cast %31 : vector<96x18xf32> to vector<6x16x18xf32>
    %cst_13 = arith.constant dense<0.000000e+00> : vector<96x18xf32>
    %33 = tpu.matmul %30, %4, %cst_13 {dimension_numbers = #tpu.dot_dimension_numbers<[1], [0], [0], [1], [0, 0, 1, 1], [], []>} : vector<96x16xf32>, vector<16x18xf32>, vector<96x18xf32> -> vector<96x18xf32>
    %34 = vector.shape_cast %33 : vector<96x18xf32> to vector<6x16x18xf32>
    %35 = vector.extract_strided_slice %32 {offsets = [0, 1, 0], sizes = [6, 1, 18], strides = [1, 1, 1]} : vector<6x16x18xf32> to vector<6x1x18xf32>
    %36 = vector.extract_strided_slice %32 {offsets = [0, 14, 0], sizes = [6, 1, 18], strides = [1, 1, 1]} : vector<6x16x18xf32> to vector<6x1x18xf32>
    %37 = tpu.concatenate %35, %32, %36 in 1 : vector<6x1x18xf32>, vector<6x16x18xf32>, vector<6x1x18xf32> -> vector<6x18x18xf32>
    %38 = vector.extract_strided_slice %34 {offsets = [0, 2, 0], sizes = [6, 1, 18], strides = [1, 1, 1]} : vector<6x16x18xf32> to vector<6x1x18xf32>
    %39 = vector.extract_strided_slice %34 {offsets = [0, 1, 0], sizes = [6, 1, 18], strides = [1, 1, 1]} : vector<6x16x18xf32> to vector<6x1x18xf32>
    %40 = vector.extract_strided_slice %34 {offsets = [0, 14, 0], sizes = [6, 1, 18], strides = [1, 1, 1]} : vector<6x16x18xf32> to vector<6x1x18xf32>
    %41 = vector.extract_strided_slice %34 {offsets = [0, 13, 0], sizes = [6, 1, 18], strides = [1, 1, 1]} : vector<6x16x18xf32> to vector<6x1x18xf32>
    %42 = tpu.concatenate %38, %39, %34, %40, %41 in 1 : vector<6x1x18xf32>, vector<6x1x18xf32>, vector<6x16x18xf32>, vector<6x1x18xf32>, vector<6x1x18xf32> -> vector<6x20x18xf32>
    %43 = vector.extract_strided_slice %42 {offsets = [0, 0, 0], sizes = [6, 18, 18], strides = [1, 1, 1]} : vector<6x20x18xf32> to vector<6x18x18xf32>
    %44 = vector.extract_strided_slice %42 {offsets = [0, 1, 0], sizes = [6, 18, 18], strides = [1, 1, 1]} : vector<6x20x18xf32> to vector<6x18x18xf32>
    %45 = arith.addf %43, %44 : vector<6x18x18xf32>
    %46 = vector.extract_strided_slice %42 {offsets = [0, 2, 0], sizes = [6, 18, 18], strides = [1, 1, 1]} : vector<6x20x18xf32> to vector<6x18x18xf32>
    %47 = arith.addf %45, %46 : vector<6x18x18xf32>
    %cst_14 = arith.constant 9.000000e+00 : f32
    %48 = vector.broadcast %cst_14 : f32 to vector<6x18x18xf32>
    %49 = arith.mulf %48, %37 : vector<6x18x18xf32>
    %50 = arith.subf %49, %47 : vector<6x18x18xf32>
    %51 = math.tanh %50 : vector<6x18x18xf32>
    %52 = math.absf %51 : vector<6x18x18xf32>
    %53 = arith.subf %28, %52 : vector<6x18x18xf32>
    %54 = math.absf %53 : vector<6x18x18xf32>
    %c0_15 = arith.constant 0 : index
    %c0_16 = arith.constant 0 : index
    %55 = vector.load %arg6[%c0_15, %c0_16] : memref<18x18xf32, #tpu.memory_space<vmem>>, vector<18x18xf32>
    %cst_17 = arith.constant dense<0.000000e+00> : vector<18x18xf32>
    %56 = vector.multi_reduction <add>, %54, %cst_17 [0] : vector<6x18x18xf32> to vector<18x18xf32>
    %57 = arith.addf %55, %56 : vector<18x18xf32>
    %c0_18 = arith.constant 0 : index
    %c0_19 = arith.constant 0 : index
    %58 = vector.load %arg6[%c0_18, %c0_19] : memref<18x18xf32, #tpu.memory_space<vmem>>, vector<18x18xf32>
    tpu.vector_store %arg6[%c0_18, %c0_19], %57 {strides = array<i32>} : memref<18x18xf32, #tpu.memory_space<vmem>>, vector<18x18xf32>,
    %c0_i32_20 = arith.constant 0 : i32
    %59 = arith.cmpi eq, %arg0, %c0_i32_20 : i32
    %60 = arith.extui %59 : i1 to i32
    %c0_i32_21 = arith.constant 0 : i32
    %61 = arith.cmpi ne, %60, %c0_i32_21 : i32
    scf.if %61 {
      %c0_22 = arith.constant 0 : index
      %c0_23 = arith.constant 0 : index
      %62 = vector.load %arg6[%c0_22, %c0_23] : memref<18x18xf32, #tpu.memory_space<vmem>>, vector<18x18xf32>
      %63 = vector.shape_cast %62 : vector<18x18xf32> to vector<1x18x18xf32>
      %cst_24 = arith.constant dense<0.000000e+00> : vector<1xf32>
      %64 = vector.multi_reduction <add>, %63, %cst_24 [1, 2] : vector<1x18x18xf32> to vector<1xf32>
      %65 = vector.shape_cast %64 : vector<1xf32> to vector<1x1x1xf32>
      %66 = vector.extract %65[0, 0, 0] : f32 from vector<1x1x1xf32>
      %67 = vector.broadcast %66 : f32 to vector<1x1xf32>
      %c0_25 = arith.constant 0 : index
      %c0_26 = arith.constant 0 : index
      %68 = vector.load %arg5[%c0_25, %c0_26] : memref<1x1xf32, #tpu.memory_space<vmem>>, vector<1x1xf32>
      tpu.vector_store %arg5[%c0_25, %c0_26], %67 {strides = array<i32>} : memref<1x1xf32, #tpu.memory_space<vmem>>, vector<1x1xf32>,
    } else {
    }
    return
  }
  func.func @transform_0(%arg0: i32) -> (i32, i32) {
    %c0_i32 = arith.constant 0 : i32
    %c0_i32_0 = arith.constant 0 : i32
    %c0_i32_1 = arith.constant 0 : i32
    return %c0_i32, %c0_i32_0 : i32, i32
  }
  func.func @transform_1(%arg0: i32) -> (i32, i32) {
    %c0_i32 = arith.constant 0 : i32
    %c0_i32_0 = arith.constant 0 : i32
    %c0_i32_1 = arith.constant 0 : i32
    return %c0_i32, %c0_i32_0 : i32, i32
  }
  func.func @transform_2(%arg0: i32) -> (i32, i32, i32) {
    %c0_i32 = arith.constant 0 : i32
    %c0_i32_0 = arith.constant 0 : i32
    %c0_i32_1 = arith.constant 0 : i32
    return %arg0, %c0_i32, %c0_i32_0 : i32, i32, i32
  }
  func.func @transform_3(%arg0: i32) -> (i32, i32, i32) {
    %c0_i32 = arith.constant 0 : i32
    %c0_i32_0 = arith.constant 0 : i32
    %c0_i32_1 = arith.constant 0 : i32
    return %arg0, %c0_i32, %c0_i32_0 : i32, i32, i32
  }
  func.func @transform_4(%arg0: i32) -> (i32, i32) {
    %c0_i32 = arith.constant 0 : i32
    %c0_i32_0 = arith.constant 0 : i32
    %c0_i32_1 = arith.constant 0 : i32
    return %c0_i32, %c0_i32_0 : i32, i32
  }
}

</mosaic_0001>

<bundles_post_ra>
// kernel: tpu_custom_call.1
= control target key start
LH: loop header
LB: loop body
LE: loop exit
PB: predicated region body
PF: predicated region fallthrough
CT: control target
= control target key end

     0   :  { %9 = vsyncpa [#allocation4], 0  ;;  %s2876_s0 = inlined_call_operand.hbm [shape: f32[16,18], index: 0, kind: input, shape index: {}]   ;;  %s2877_s1 = inlined_call_operand.hbm [shape: f32[16,18], index: 1, kind: input, shape index: {}]   ;;  %s2878_s2 = inlined_call_operand.hbm [shape: f32[6,16,16], index: 2, kind: input, shape index: {}]   ;;  %s2879_s3 = inlined_call_operand.hbm [shape: f32[6,16,16], index: 3, kind: input, shape index: {}]   ;;  %s2880_s4 = inlined_call_operand.hbm [shape: f32[1,1], index: 4, kind: output, shape index: {}]  }
   0x1   :  { %10 = vsyncpa [#allocation7], 0 }
   0x2   :  { %11 = vsyncpa [#allocation10], 0 }
   0x3   :  { %12 = vsyncpa [#allocation5], 0  ;;  %s2032_s15 = smov [#allocation6]   ;;  %s2033_s17 = smov [#allocation3]  }
   0x4   :  { %s30_s16 = sshll.u32 %s2032_s15, 4  ;;  %s18_s18 = sshll.u32 %s2033_s17, 4  ;;  %s31_s16 = int_to_ptr.vmem [resolvable:$true] %s30_s16  ;;  %s2065_s18 = int_to_ptr.vmem [resolvable:$true] %s18_s18 }
   0x5   :  { %s1914_s21 = scalar_lea.hbm %s2877_s1, 256 }
   0x6   :  { %p1915_p0 = scmp.ne.s32.totalorder %s2877_s1, %s1914_s21  ;;  %p1918_p1 = scmp.lt.u32.totalorder %s1914_s21, %s2877_s1 }
   0x8   :  { %p1920_p2 = pnand %p1918_p1, %p1915_p0 }
   0xa   :  { %1923 = shalt.err (!%p1920_p2)
}
   0xb   :  { %s1924_s26 = scalar_lea.vmem %s31_s16, 256  ;;  %p1929_p4 = scmp.lt.s32.totalorder %s31_s16, %s31_s16 }
   0xc   :  { %p1925_p3 = scmp.ne.s32.totalorder %s31_s16, %s1924_s26  ;;  %p1930_p5 = scmp.lt.s32.totalorder %s1924_s26, %s1924_s26 }
   0xe   :  { %p1931_p6 = por %p1930_p5, %p1929_p4 }
  0x10   :  { %p1932_p7 = pnand %p1931_p6, %p1925_p3 }
  0x12   :  { %1935 = shalt.err (!%p1932_p7)
}
  0x13   :  { %s2034_s27 = smov 128   ;;  %s2035_s28 = smov 8  }
  0x14   :  { %36 = dma.hbm_to_vmem [thread:$0]  %s2877_s1, 256, %s31_s16, [#allocation7], %s2034_s27, %s2034_s27, %s2035_s28  }
  0x15   :  { %s1936_s7 = scalar_lea.hbm %s2876_s0, 256 }
  0x16   :  { %p1937_p8 = scmp.ne.s32.totalorder %s2876_s0, %s1936_s7  ;;  %p1940_p9 = scmp.lt.u32.totalorder %s1936_s7, %s2876_s0 }
  0x18   :  { %p1942_p10 = pnand %p1940_p9, %p1937_p8 }
  0x1a   :  { %1945 = shalt.err (!%p1942_p10)
}
  0x1b   :  { %s1946_s12 = scalar_lea.vmem %s2065_s18, 256  ;;  %p1951_p12 = scmp.lt.s32.totalorder %s2065_s18, %s2065_s18 }
  0x1c   :  { %p1947_p11 = scmp.ne.s32.totalorder %s2065_s18, %s1946_s12  ;;  %p1952_p13 = scmp.lt.s32.totalorder %s1946_s12, %s1946_s12 }
  0x1e   :  { %p1953_p0 = por %p1952_p13, %p1951_p12 }
  0x20   :  { %p1954_p1 = pnand %p1953_p0, %p1947_p11 }
  0x22   :  { %1957 = shalt.err (!%p1954_p1)
}
  0x23   :  { %24 = dma.hbm_to_vmem [thread:$0]  %s2876_s0, 256, %s2065_s18, [#allocation4], %s2034_s27, %s2034_s27, %s2035_s28  }
  0x24   :  { %s2036_s14 = smov [#allocation8]   ;;  %s2037_s16 = smov [#allocation9]  }
  0x25   :  { %s42_s15 = sshll.u32 %s2036_s14, 4  ;;  %s54_s17 = sshll.u32 %s2037_s16, 4  ;;  %s43_s15 = int_to_ptr.vmem [resolvable:$true] %s42_s15  ;;  %s2102_s17 = int_to_ptr.vmem [resolvable:$true] %s54_s17 }
  0x26   :  { %s1958_s21 = scalar_lea.hbm %s2878_s2, 1536 }
  0x27   :  { %p1959_p2 = scmp.ne.s32.totalorder %s2878_s2, %s1958_s21  ;;  %p1962_p3 = scmp.lt.u32.totalorder %s1958_s21, %s2878_s2 }
  0x29   :  { %p1964_p4 = pnand %p1962_p3, %p1959_p2 }
  0x2b   :  { %1967 = shalt.err (!%p1964_p4)
}
  0x2c   :  { %s1968_s0 = scalar_lea.vmem %s43_s15, 1536  ;;  %p1973_p6 = scmp.lt.s32.totalorder %s43_s15, %s43_s15 }
  0x2d   :  { %p1969_p5 = scmp.ne.s32.totalorder %s43_s15, %s1968_s0  ;;  %p1974_p7 = scmp.lt.s32.totalorder %s1968_s0, %s1968_s0 }
  0x2f   :  { %p1975_p8 = por %p1974_p7, %p1973_p6 }
  0x31   :  { %p1976_p9 = pnand %p1975_p8, %p1969_p5 }
  0x33   :  { %1979 = shalt.err (!%p1976_p9)
}
  0x34   :  { %48 = dma.hbm_to_vmem [thread:$0]  %s2878_s2, 1536, %s43_s15, [#allocation7], %s2034_s27, %s2034_s27, %s2035_s28  }
  0x35   :  { %s1980_s5 = scalar_lea.hbm %s2879_s3, 1536 }
  0x36   :  { %p1981_p10 = scmp.ne.s32.totalorder %s2879_s3, %s1980_s5  ;;  %p1984_p11 = scmp.lt.u32.totalorder %s1980_s5, %s2879_s3 }
  0x38   :  { %p1986_p12 = pnand %p1984_p11, %p1981_p10 }
  0x3a   :  { %1989 = shalt.err (!%p1986_p12)
}
  0x3b   :  { %s1990_s10 = scalar_lea.vmem %s2102_s17, 1536  ;;  %p1995_p0 = scmp.lt.s32.totalorder %s2102_s17, %s2102_s17 }
  0x3c   :  { %p1991_p13 = scmp.ne.s32.totalorder %s2102_s17, %s1990_s10  ;;  %p1996_p1 = scmp.lt.s32.totalorder %s1990_s10, %s1990_s10 }
  0x3e   :  { %p1997_p2 = por %p1996_p1, %p1995_p0 }
  0x40   :  { %p1998_p3 = pnand %p1997_p2, %p1991_p13 }
  0x42   :  { %2001 = shalt.err (!%p1998_p3)
}
  0x43   :  { %60 = dma.hbm_to_vmem [thread:$0]  %s2879_s3, 1536, %s2102_s17, [#allocation10], %s2034_s27, %s2034_s27, %s2035_s28  }
  0x44   :  { %2024 = dma.done.wait [#allocation4], 256  }
  0x45   :  { %2025 = vsyncadd [#allocation4], 4294967040 }
  0x46   :  { %2026 = dma.done.wait [#allocation7], 1792  }
  0x47   :  { %2027 = vsyncadd [#allocation7], 4294965504 }
  0x48   :  { %2028 = dma.done.wait [#allocation10], 1536  }
  0x49   :  { %2029 = vsyncadd [#allocation10], 4294965760  ;;  %vm98_vm0 = vcmask 130048   ;;  %v84_v0 = vld [vmem:[#allocation6] sm:$0xff]  ;;  %v85_v1 = vld [vmem:[#allocation6 + $0x8] sm:$0xff]  ;;  %vm494_vm1 = vcmask 1041408  }
  0x4a   :  { %v86_v2 = vld [vmem:[#allocation8] sm:$0xff]  ;;  %v1820_v3 = vpack.c.bf16 %v85_v1, %v84_v0  ;;  %v83_v5 = vld [vmem:[#allocation3 + $0x8] sm:$0xff]  ;;  %v88_v8 = vld [vmem:[#allocation8 + $0x10] sm:$0xff]  ;;  %vm573_vm2 = vcmask 1042432   ;;  %vm409_vm3 = vcmask 1040384   ;;  %vm592_vm4 = vcmask 1046528  }
  0x4b   :  { %1754 = vmatprep.mubr.msk.f32.mxu1 %vm98_vm0, %v86_v2  ;;  %v82_v4 = vld [vmem:[#allocation3] sm:$0xff]  ;;  %1732 = vmatprep.mubr.msk.f32.mxu0 %vm98_vm0, %v86_v2  ;;  %v87_v7 = vld [vmem:[#allocation8 + $0x8] sm:$0xff]  ;;  %v89_v9 = vld [vmem:[#allocation8 + $0x18] sm:$0xff]  ;;  %vm659_vm5 = vcmask 1045504   ;;  %vm80_vm6 = vcmask 140288   ;;  %vm77_vm7 = vcmask 146432  }
  0x4c   :  { %v1816_v6 = vpack.c.bf16 %v83_v5, %v82_v4  ;;  %1821 = vmatprep.subr.bf16.mxu1 %v1820_v3  ;;  %v90_v10 = vld [vmem:[#allocation8 + $0x20] sm:$0xff]  ;;  %v91_v11 = vld [vmem:[#allocation8 + $0x28] sm:$0xff]  ;;  %v92_v12 = vld [vmem:[#allocation8 + $0x30] sm:$0xff]  ;;  %s2039_s3 = smov [#allocation11]   ;;  %vm1605_vm8 = vcmask 0  }
  0x4d   :  { %1823 = vmatpush3.bf16.msra.mxu1 %v1820_v3  ;;  %v93_v13 = vld [vmem:[#allocation8 + $0x38] sm:$0xff]  ;;  %v94_v14 = vld [vmem:[#allocation8 + $0x40] sm:$0xff]  ;;  %v95_v15 = vld [vmem:[#allocation8 + $0x48] sm:$0xff]  ;;  %s1613_s27 = sshll.u32 %s2039_s3, 4  ;;  %s1614_s27 = int_to_ptr.vmem [resolvable:$true] %s1613_s27 }
  0x4e   :  { %1817 = vmatprep.subr.bf16.mxu0 %v1816_v6  ;;  %1829 = vmatprep.subr.bf16.mxu1 %v1820_v3  ;;  %v96_v16 = vld [vmem:[#allocation8 + $0x50] sm:$0xff]  ;;  %v97_v17 = vld [vmem:[#allocation8 + $0x58] sm:$0xff]  ;;  %v798_v18 = vld [vmem:[#allocation9] sm:$0xff]  ;;  %s2002_s12 = scalar_lea.vmem %s1614_s27, 16  ;;  %s2006_s1 = scalar_lea.vmem %s1614_s27, 32 }
  0x4f   :  { %1819 = vmatpush3.bf16.msra.mxu0 %v1816_v6  ;;  %v799_v19 = vld [vmem:[#allocation9 + $0x8] sm:$0xff]  ;;  %v800_v20 = vld [vmem:[#allocation9 + $0x10] sm:$0xff]  ;;  %v801_v21 = vld [vmem:[#allocation9 + $0x18] sm:$0xff]  ;;  %p2003_p4 = scmp.ne.s32.totalorder %s1614_s27, %s2002_s12  ;;  %p2007_p5 = scmp.lt.s32.totalorder %s1614_s27, %s1614_s27 }
  0x50   :  { %1825 = vmatprep.subr.bf16.mxu0 %v1816_v6  ;;  %1755 = vmatmul.mubr.msk.f32.vlgmr.msra.gmra.mrb[0].mxu1 %vm98_vm0, %v87_v7  ;;  %v802_v22 = vld [vmem:[#allocation9 + $0x20] sm:$0xff]  ;;  %v803_v23 = vld [vmem:[#allocation9 + $0x28] sm:$0xff]  ;;  %v804_v24 = vld [vmem:[#allocation9 + $0x30] sm:$0xff]  ;;  %p2008_p6 = scmp.lt.s32.totalorder %s2006_s1, %s2002_s12 }
  0x51   :  { %1831 = vmatpush3.bf16.msra.mxu1 %v1820_v3  ;;  %1757 = vmatprep.mubr.msk.f32.mxu1 %vm98_vm0, %v88_v8  ;;  %v805_v25 = vld [vmem:[#allocation9 + $0x38] sm:$0xff]  ;;  %v806_v26 = vld [vmem:[#allocation9 + $0x40] sm:$0xff]  ;;  %v807_v27 = vld [vmem:[#allocation9 + $0x48] sm:$0xff] }
  0x52   :  { %1733 = vmatmul.mubr.msk.f32.vlgmr.msra.gmra.mrb[0].mxu0 %vm98_vm0, %v87_v7  ;;  %v808_v28 = vld [vmem:[#allocation9 + $0x50] sm:$0xff]  ;;  %v809_v29 = vld [vmem:[#allocation9 + $0x58] sm:$0xff]  ;;  %p2009_p7 = por %p2008_p6, %p2007_p5 }
  0x53   :  { %1827 = vmatpush3.bf16.msra.mxu0 %v1816_v6  ;;  %1735 = vmatprep.mubr.msk.f32.mxu0 %vm98_vm0, %v88_v8 }
  0x54   :  { %1758 = vmatmul.mubr.msk.f32.gmra.mrb[2].mxu1 %vm98_vm0, %v89_v9  ;;  %p2010_p8 = pnand %p2009_p7, %p2003_p4 }
  0x55   :  { %1760 = vmatprep.mubr.msk.f32.mxu1 %vm98_vm0, %v90_v10 }
  0x56   :  { %1736 = vmatmul.mubr.msk.f32.gmra.mrb[2].mxu0 %vm98_vm0, %v89_v9 }
  0x57   :  { %1738 = vmatprep.mubr.msk.f32.mxu0 %vm98_vm0, %v90_v10 }
  0x58   :  { %1761 = vmatmul.mubr.msk.f32.gmra.mrb[4].mxu1 %vm98_vm0, %v91_v11 }
  0x59   :  { %1763 = vmatprep.mubr.msk.f32.mxu1 %vm98_vm0, %v92_v12 }
  0x5a   :  { %1739 = vmatmul.mubr.msk.f32.gmra.mrb[4].mxu0 %vm98_vm0, %v91_v11 }
  0x5b   :  { %1741 = vmatprep.mubr.msk.f32.mxu0 %vm98_vm0, %v92_v12 }
  0x5c   :  { %1764 = vmatmul.mubr.msk.f32.gmra.mrb[6].mxu1 %vm98_vm0, %v93_v13 }
  0x5d   :  { %1766 = vmatprep.mubr.msk.f32.mxu1 %vm98_vm0, %v94_v14 }
  0x5e   :  { %1742 = vmatmul.mubr.msk.f32.gmra.mrb[6].mxu0 %vm98_vm0, %v93_v13 }
  0x5f   :  { %1744 = vmatprep.mubr.msk.f32.mxu0 %vm98_vm0, %v94_v14 }
  0x60   :  { %1767 = vmatmul.mubr.msk.f32.gmra.mrb[8].mxu1 %vm98_vm0, %v95_v15 }
  0x61   :  { %1769 = vmatprep.mubr.msk.f32.mxu1 %vm98_vm0, %v96_v16 }
  0x62   :  { %1745 = vmatmul.mubr.msk.f32.gmra.mrb[8].mxu0 %vm98_vm0, %v95_v15 }
  0x63   :  { %1747 = vmatprep.mubr.msk.f32.mxu0 %vm98_vm0, %v96_v16 }
  0x64   :  { %1770 = vmatmul.mubr.msk.f32.gmra.mrb[10].mxu1 %vm98_vm0, %v97_v17 }
  0x65   :  { %1798 = vmatprep.mubr.msk.f32.mxu1 %vm98_vm0, %v798_v18 }
  0x66   :  { %1748 = vmatmul.mubr.msk.f32.gmra.mrb[10].mxu0 %vm98_vm0, %v97_v17 }
  0x67   :  { %1776 = vmatprep.mubr.msk.f32.mxu0 %vm98_vm0, %v798_v18 }
  0x68   :  { %1799 = vmatmul.mubr.msk.f32.vlgmr.msra.gmra.mrb[12].mxu1 %vm98_vm0, %v799_v19 }
  0x69   :  { %1801 = vmatprep.mubr.msk.f32.mxu1 %vm98_vm0, %v800_v20 }
  0x6a   :  { %1777 = vmatmul.mubr.msk.f32.vlgmr.msra.gmra.mrb[12].mxu0 %vm98_vm0, %v799_v19 }
  0x6b   :  { %1779 = vmatprep.mubr.msk.f32.mxu0 %vm98_vm0, %v800_v20 }
  0x6c   :  { %1802 = vmatmul.mubr.msk.f32.gmra.mrb[14].mxu1 %vm98_vm0, %v801_v21 }
  0x6d   :  { %1804 = vmatprep.mubr.msk.f32.mxu1 %vm98_vm0, %v802_v22 }
  0x6e   :  { %1780 = vmatmul.mubr.msk.f32.gmra.mrb[14].mxu0 %vm98_vm0, %v801_v21 }
  0x6f   :  { %1782 = vmatprep.mubr.msk.f32.mxu0 %vm98_vm0, %v802_v22 }
  0x70   :  { %1805 = vmatmul.mubr.msk.f32.gmra.mrb[16].mxu1 %vm98_vm0, %v803_v23 }
  0x71   :  { %1807 = vmatprep.mubr.msk.f32.mxu1 %vm98_vm0, %v804_v24 }
  0x72   :  { %1783 = vmatmul.mubr.msk.f32.gmra.mrb[16].mxu0 %vm98_vm0, %v803_v23 }
  0x73   :  { %1785 = vmatprep.mubr.msk.f32.mxu0 %vm98_vm0, %v804_v24 }
  0x74   :  { %1808 = vmatmul.mubr.msk.f32.gmra.mrb[18].mxu1 %vm98_vm0, %v805_v25 }
  0x75   :  { %1810 = vmatprep.mubr.msk.f32.mxu1 %vm98_vm0, %v806_v26 }
  0x76   :  { %1786 = vmatmul.mubr.msk.f32.gmra.mrb[18].mxu0 %vm98_vm0, %v805_v25 }
  0x77   :  { %1788 = vmatprep.mubr.msk.f32.mxu0 %vm98_vm0, %v806_v26 }
  0x78   :  { %1811 = vmatmul.mubr.msk.f32.gmra.mrb[20].mxu1 %vm98_vm0, %v807_v27 }
  0x79   :  { %1813 = vmatprep.mubr.msk.f32.mxu1 %vm98_vm0, %v808_v28 }
  0x7a   :  { %1789 = vmatmul.mubr.msk.f32.gmra.mrb[20].mxu0 %vm98_vm0, %v807_v27 }
  0x7b   :  { %1791 = vmatprep.mubr.msk.f32.mxu0 %vm98_vm0, %v808_v28 }
  0x7c   :  { %1814 = vmatmul.mubr.msk.f32.gmra.mrb[22].mxu1 %vm98_vm0, %v809_v29 }
  0x7e   :  { %1792 = vmatmul.mubr.msk.f32.gmra.mrb[22].mxu0 %vm98_vm0, %v809_v29 }
 0x123   :  { %v1756_v30 = vpop.f32.mrb[0].mxu1 }
 0x124   :  { %v496_v31 = vrot.slane %v1756_v30, 6  ;;  %v531_v32 = vrot.slane %v1756_v30, 4  ;;  %v543_v33 = vrot.slane %v1756_v30, 2  ;;  %v326_v34 = vpop.f32.mrb[1].mxu1 }
 0x125   :  { %v476_v35 = vrot.slane %v326_v34, 2  ;;  %v495_v36 = vrot.slane %v326_v34, 6  ;;  %v1734_v37 = vpop.f32.mrb[0].mxu0 }
 0x126   :  { %v567_v38 = vsel %vm494_vm1, %v496_v31, %v531_v32  ;;  %v411_v39 = vrot.slane %v1734_v37, 7  ;;  %v446_v40 = vrot.slane %v1734_v37, 5  ;;  %v201_v41 = vpop.f32.mrb[1].mxu0 }
 0x127   :  { %v574_v42 = vsel %vm573_vm2, %v567_v38, %v543_v33  ;;  %v497_v43 = vsel %vm494_vm1, %v495_v36, %v496_v31  ;;  %v555_v44 = vsel %vm409_vm3, %v476_v35, %v326_v34  ;;  %v1759_v45 = vpop.f32.mrb[2].mxu1  ;;  %v391_v46 = vrot.slane %v201_v41, 1 }
 0x128   :  { %v596_v47 = vrot.slane %v574_v42, 1  ;;  %v663_v48 = vrot.slane %v574_v42, 2  ;;  %v561_v49 = vsel %vm494_vm1, %v555_v44, %v495_v36  ;;  %v594_v50 = vrot.slane %v497_v43, 1  ;;  %v336_v51 = vpop.f32.mrb[3].mxu1 }
 0x129   :  { %v593_v52 = vrot.slane %v561_v49, 1  ;;  %v660_v53 = vrot.slane %v561_v49, 2  ;;  %v661_v54 = vrot.slane %v497_v43, 2  ;;  %v499_v55 = vrot.slane %v1759_v45, 6  ;;  %v2192_v56 = vpop.f32.mrb[2].mxu0 }
 0x12a   :  { %v643_v57 = vadd.f32 %v596_v47, %v574_v42  ;;  %v597_v58 = vsel %vm592_vm4, %v594_v50, %v596_v47  ;;  %v532_v59 = vrot.slane %v1759_v45, 4  ;;  %v544_v60 = vrot.slane %v1759_v45, 2  ;;  %v2195_v61 = vpop.f32.mrb[3].mxu0 }
 0x12b   :  { %v595_v62 = vsel %vm592_vm4, %v593_v52, %v594_v50  ;;  %v642_v63 = vadd.f32 %v597_v58, %v497_v43  ;;  %v662_v0 = vsel %vm659_vm5, %v660_v53, %v661_v54  ;;  %v464_v1 = vsel %vm409_vm3, %v411_v39, %v446_v40  ;;  %v2200_v2 = vpop.f32.mrb[4].mxu1 }
 0x12c   :  { %v641_v3 = vadd.f32 %v595_v62, %v561_v49  ;;  %v568_v4 = vsel %vm494_vm1, %v499_v55, %v532_v59  ;;  %v2203_v5 = vadd.f32 %v663_v48, %v643_v57  ;;  %v2205_v6 = vmul.f32 9.0, %v464_v1  ;;  %v346_v7 = vpop.f32.mrb[5].mxu1 }
 0x12d   :  { %v2208_v8 = vsel %vm573_vm2, %v568_v4, %v544_v60  ;;  %v477_v9 = vrot.slane %v336_v51, 2  ;;  %v498_v10 = vrot.slane %v336_v51, 6  ;;  %v410_v11 = vrot.slane %v201_v41, 7  ;;  %v2210_v12 = vpop.f32.mrb[4].mxu0 }
 0x12e   :  { %v2212_v13 = vadd.f32 %v662_v0, %v641_v3  ;;  %v601_v14 = vrot.slane %v2208_v8, 1  ;;  %v746_v15 = vsub.f32 %v2205_v6, %v2203_v5  ;;  %v2217_v16 = vpop.f32.mrb[5].mxu0  ;;  %v668_v23 = vrot.slane %v2208_v8, 2 }
 0x12f   :  { %v2220_v17 = vsel %vm494_vm1, %v498_v10, %v499_v55  ;;  %v556_v18 = vsel %vm409_vm3, %v477_v9, %v336_v51  ;;  %v412_v19 = vsel %vm409_vm3, %v410_v11, %v411_v39  ;;  %v458_v20 = vsel %vm409_vm3, %v391_v46, %v410_v11  ;;  %v2225_v21 = vpop.f32.mrb[6].mxu1 }
 0x130   :  { %v646_v22 = vadd.f32 %v601_v14, %v2208_v8  ;;  %v562_v24 = vsel %vm494_vm1, %v556_v18, %v498_v10  ;;  %v599_v25 = vrot.slane %v2220_v17, 1  ;;  %v2231_v26 = vpop.f32.mrb[7].mxu1  ;;  %v666_v29 = vrot.slane %v2220_v17, 2 }
 0x131   :  { %v598_v27 = vrot.slane %v562_v24, 1  ;;  %v665_v28 = vrot.slane %v562_v24, 2  ;;  %v664_v30 = vsel %vm659_vm5, %v661_v54, %v663_v48  ;;  %v2235_v31 = vpop.f32.mrb[6].mxu0  ;;  %v2240_v34 = vmul.f32 9.0, %v458_v20 }
 0x132   :  { %v602_v32 = vsel %vm592_vm4, %v599_v25, %v601_v14  ;;  %v2238_v33 = vadd.f32 %v664_v30, %v642_v63  ;;  %v2242_v35 = vmul.f32 9.0, %v412_v19  ;;  %v2244_v36 = vpop.f32.mrb[7].mxu0  ;;  %v502_v40 = vrot.slane %v2200_v2, 6 }
 0x133   :  { %v600_v37 = vsel %vm592_vm4, %v598_v27, %v599_v25  ;;  %v645_v38 = vadd.f32 %v602_v32, %v2220_v17  ;;  %v667_v39 = vsel %vm659_vm5, %v665_v28, %v666_v29  ;;  %v2250_v41 = vpop.f32.mrb[8].mxu1  ;;  %v744_v43 = vsub.f32 %v2240_v34, %v2212_v13 }
 0x134   :  { %v644_v42 = vadd.f32 %v600_v37, %v562_v24  ;;  %v745_v44 = vsub.f32 %v2242_v35, %v2238_v33  ;;  %v533_v45 = vrot.slane %v2200_v2, 4  ;;  %v2257_v46 = vpop.f32.mrb[9].mxu1  ;;  %v545_v47 = vrot.slane %v2200_v2, 2 }
 0x135   :  { %v414_v48 = vrot.slane %v2192_v56, 7  ;;  %v447_v49 = vrot.slane %v2192_v56, 5  ;;  %v2262_v50 = vpop.f32.mrb[8].mxu0  ;;  %v2269_v53 = vadd.f32 %v668_v23, %v646_v22  ;;  %v478_v54 = vrot.slane %v346_v7, 2 }
 0x136   :  { %v2264_v51 = vadd.f32 %v667_v39, %v644_v42  ;;  %v569_v52 = vsel %vm494_vm1, %v502_v40, %v533_v45  ;;  %v2271_v55 = vpop.f32.mrb[9].mxu0  ;;  %v501_v59 = vrot.slane %v346_v7, 6  ;;  %v392_v3 = vrot.slane %v2195_v61, 1 }
 0x137   :  { %v2274_v57 = vsel %vm573_vm2, %v569_v52, %v545_v47  ;;  %v465_v58 = vsel %vm409_vm3, %v414_v48, %v447_v49  ;;  %v2277_v56 = vpop.f32.mrb[10].mxu1  ;;  %v557_v63 = vsel %vm409_vm3, %v478_v54, %v346_v7  ;;  %v413_v4 = vrot.slane %v2195_v61, 7 }
 0x138   :  { %v606_v60 = vrot.slane %v2274_v57, 1  ;;  %v731_v62 = vmul.f32 9.0, %v465_v58  ;;  %v2281_v0 = vpop.f32.mrb[11].mxu1  ;;  %v2284_v1 = vsel %vm494_vm1, %v501_v59, %v502_v40  ;;  %v563_v2 = vsel %vm494_vm1, %v557_v63, %v501_v59 }
 0x139   :  { %v2289_v5 = vpop.f32.mrb[10].mxu0  ;;  %1842 = vtanh.f32 %v746_v15  ;;  %v603_v9 = vrot.slane %v563_v2, 1  ;;  %v604_v10 = vrot.slane %v2284_v1, 1  ;;  %v673_v11 = vrot.slane %v2274_v57, 2 }
 0x13a   :  { %v749_v6 = vsub.f32 %v731_v62, %v2269_v53  ;;  %v2293_v7 = vpop.f32.mrb[11].mxu0  ;;  %v670_v13 = vrot.slane %v563_v2, 2  ;;  %v671_v14 = vrot.slane %v2284_v1, 2  ;;  %v415_v17 = vsel %vm409_vm3, %v413_v4, %v414_v48 }
 0x13b   :  { %v2298_v18 = vpop.f32.mrb[12].mxu1  ;;  %v649_v61 = vadd.f32 %v606_v60, %v2274_v57  ;;  %v605_v15 = vsel %vm592_vm4, %v603_v9, %v604_v10  ;;  %v607_v19 = vsel %vm592_vm4, %v604_v10, %v606_v60  ;;  %v459_v20 = vsel %vm409_vm3, %v392_v3, %v413_v4 }
 0x13c   :  { %v2304_v22 = vpop.f32.mrb[13].mxu1  ;;  %v647_v24 = vadd.f32 %v605_v15, %v563_v2  ;;  %v648_v25 = vadd.f32 %v607_v19, %v2284_v1  ;;  %v672_v27 = vsel %vm659_vm5, %v670_v13, %v671_v14  ;;  %v669_v28 = vsel %vm659_vm5, %v666_v29, %v668_v23 }
 0x13d   :  { %v2313_v30 = vpop.f32.mrb[12].mxu0  ;;  %v2315_v32 = vadd.f32 %v669_v28, %v645_v38  ;;  %v2317_v34 = vmul.f32 9.0, %v459_v20  ;;  %v2319_v37 = vmul.f32 9.0, %v415_v17  ;;  %v505_v39 = vrot.slane %v2225_v21, 6 }
 0x13e   :  { %v2322_v40 = vpop.f32.mrb[13].mxu0  ;;  %v2324_v42 = vadd.f32 %v672_v27, %v647_v24  ;;  %v534_v45 = vrot.slane %v2225_v21, 4  ;;  %v546_v8 = vrot.slane %v2225_v21, 2  ;;  %v417_v23 = vrot.slane %v2210_v12, 7 }
 0x13f   :  { %v2329_v29 = vpop.f32.mrb[14].mxu1  ;;  %1844 = vtanh.f32 %v744_v43  ;;  %v747_v38 = vsub.f32 %v2317_v34, %v2264_v51  ;;  %v748_v47 = vsub.f32 %v2319_v37, %v2315_v32  ;;  %v448_v48 = vrot.slane %v2210_v12, 5 }
 0x140   :  { %v2336_v49 = vpop.f32.mrb[15].mxu1  ;;  %v570_v52 = vsel %vm494_vm1, %v505_v39, %v534_v45  ;;  %v2341_v21 = vadd.f32 %v673_v11, %v649_v61  ;;  %v479_v53 = vrot.slane %v2231_v26, 2  ;;  %v504_v43 = vrot.slane %v2231_v26, 6 }
 0x141   :  { %v2345_v54 = vpop.f32.mrb[14].mxu0  ;;  %v2348_v51 = vsel %vm573_vm2, %v570_v52, %v546_v8  ;;  %v466_v58 = vsel %vm409_vm3, %v417_v23, %v448_v48  ;;  %1846 = vtanh.f32 %v745_v44  ;;  %v393_v4 = vrot.slane %v2217_v16, 1 }
 0x142   :  { %v2351_v12 = vpop.f32.mrb[15].mxu0  ;;  %v611_v59 = vrot.slane %v2348_v51, 1  ;;  %v734_v60 = vmul.f32 9.0, %v466_v58  ;;  %v2362_v2 = vsel %vm494_vm1, %v504_v43, %v505_v39  ;;  %v558_v3 = vsel %vm409_vm3, %v479_v53, %v2231_v26 }
 0x143   :  { %v2357_v62 = vpop.f32.mrb[16].mxu1  ;;  %v2359_v63 = vpop.eup %1842  ;;  %v416_v9 = vrot.slane %v2217_v16, 7  ;;  %1848 = vtanh.f32 %v749_v6  ;;  %v564_v35 = vsel %vm494_vm1, %v558_v3, %v504_v43  ;;  %v609_v44 = vrot.slane %v2362_v2, 1 }
 0x144   :  { %v2368_v10 = vpop.f32.mrb[17].mxu1  ;;  %v752_v33 = vsub.f32 %v734_v60, %v2341_v21  ;;  %v608_v17 = vrot.slane %v564_v35, 1  ;;  %v675_v61 = vrot.slane %v564_v35, 2  ;;  %v676_v15 = vrot.slane %v2362_v2, 2 }
 0x145   :  { %v2373_v13 = vpop.f32.mrb[16].mxu0  ;;  %v418_v26 = vsel %vm409_vm3, %v416_v9, %v417_v23  ;;  %v652_v16 = vadd.f32 %v611_v59, %v2348_v51  ;;  %v678_v6 = vrot.slane %v2348_v51, 2  ;;  %v612_v20 = vsel %vm592_vm4, %v609_v44, %v611_v59 }
 0x146   :  { %v2377_v19 = vpop.f32.mrb[17].mxu0  ;;  %v460_v24 = vsel %vm409_vm3, %v393_v4, %v416_v9  ;;  %v610_v28 = vsel %vm592_vm4, %v608_v17, %v609_v44  ;;  %v2387_v32 = vadd.f32 %v612_v20, %v2362_v2  ;;  %v677_v34 = vsel %vm659_vm5, %v675_v61, %v676_v15 }
 0x147   :  { %v2383_v27 = vpop.f32.mrb[18].mxu1  ;;  %v674_v37 = vsel %vm659_vm5, %v671_v14, %v673_v11  ;;  %v650_v45 = vadd.f32 %v610_v28, %v564_v35  ;;  %v732_v23 = vmul.f32 9.0, %v460_v24  ;;  %v733_v48 = vmul.f32 9.0, %v418_v26 }
 0x148   :  { %v2397_v39 = vpop.f32.mrb[19].mxu1  ;;  %v715_v8 = vadd.f32 %v674_v37, %v648_v25  ;;  %v508_v53 = vrot.slane %v2250_v41, 6  ;;  %v535_v43 = vrot.slane %v2250_v41, 4  ;;  %v547_v57 = vrot.slane %v2250_v41, 2 }
 0x149   :  { %v2399_v52 = vpop.f32.mrb[18].mxu0  ;;  %v2401_v21 = vpop.eup %1844  ;;  %v420_v1 = vrot.slane %v2235_v31, 7  ;;  %v2409_v11 = vadd.f32 %v677_v34, %v650_v45  ;;  %v750_v14 = vsub.f32 %v732_v23, %v2324_v42  ;;  %v449_v58 = vrot.slane %v2235_v31, 5 }
 0x14a   :  { %v2407_v51 = vpop.f32.mrb[19].mxu0  ;;  %v751_v25 = vsub.f32 %v733_v48, %v715_v8  ;;  %1850 = vtanh.f32 %v747_v38  ;;  %v571_v60 = vsel %vm494_vm1, %v508_v53, %v535_v43  ;;  %v480_v3 = vrot.slane %v2257_v46, 2 }
 0x14b   :  { %v2413_v59 = vpop.f32.mrb[20].mxu1  ;;  %v507_v41 = vrot.slane %v2257_v46, 6  ;;  %v2420_v9 = vpop.eup %1846  ;;  %1852 = vtanh.f32 %v748_v47  ;;  %v2423_v35 = vsel %vm573_vm2, %v571_v60, %v547_v57  ;;  %v467_v42 = vsel %vm409_vm3, %v420_v1, %v449_v58 }
 0x14c   :  { %v2418_v4 = vpop.f32.mrb[21].mxu1  ;;  %v719_v31 = vadd.f32 %v678_v6, %v652_v16  ;;  %1854 = vtanh.f32 %v752_v33  ;;  %v616_v61 = vrot.slane %v2423_v35, 1  ;;  %v737_v47 = vmul.f32 9.0, %v467_v42 }
 0x14d   :  { %v2426_v44 = vpop.f32.mrb[20].mxu0  ;;  %v2433_v20 = vpop.eup %1848  ;;  %1856 = vtanh.f32 %v750_v14  ;;  %v2436_v24 = vsel %vm494_vm1, %v507_v41, %v508_v53  ;;  %v559_v16 = vsel %vm409_vm3, %v480_v3, %v2257_v46  ;;  %v394_v45 = vrot.slane %v2244_v36, 1 }
 0x14e   :  { %v2431_v26 = vpop.f32.mrb[21].mxu0  ;;  %v565_v34 = vsel %vm494_vm1, %v559_v16, %v507_v41  ;;  %v614_v33 = vrot.slane %v2436_v24, 1  ;;  %v681_v37 = vrot.slane %v2436_v24, 2  ;;  %v755_v23 = vsub.f32 %v737_v47, %v719_v31 }
 0x14f   :  { %v2440_v28 = vpop.f32.mrb[22].mxu1  ;;  %v613_v48 = vrot.slane %v565_v34, 1  ;;  %v680_v43 = vrot.slane %v565_v34, 2  ;;  %v419_v53 = vrot.slane %v2244_v36, 7  ;;  %1858 = vtanh.f32 %v751_v25 }
 0x150   :  { %v2446_v8 = vpop.f32.mrb[23].mxu1  ;;  %v655_v46 = vadd.f32 %v616_v61, %v2423_v35  ;;  %v617_v14 = vsel %vm592_vm4, %v614_v33, %v616_v61  ;;  %v679_v58 = vsel %vm659_vm5, %v676_v15, %v678_v6  ;;  %v511_v36 = vrot.slane %v2277_v56, 6 }
 0x151   :  { %v2449_v57 = vpop.f32.mrb[22].mxu0  ;;  %v615_v3 = vsel %vm592_vm4, %v613_v48, %v614_v33  ;;  %v654_v41 = vadd.f32 %v617_v14, %v2436_v24  ;;  %v682_v42 = vsel %vm659_vm5, %v680_v43, %v681_v37  ;;  %v421_v25 = vsel %vm409_vm3, %v419_v53, %v420_v1 }
 0x152   :  { %v2456_v60 = vpop.f32.mrb[23].mxu0  ;;  %v653_v31 = vadd.f32 %v615_v3, %v565_v34  ;;  %v461_v47 = vsel %vm409_vm3, %v394_v45, %v419_v53  ;;  %v718_v61 = vadd.f32 %v679_v58, %v2387_v32  ;;  %v736_v16 = vmul.f32 9.0, %v421_v25 }
 0x153   :  { %2883 = vst [vmem:[#allocation16_spill] sm:$0xff] %v2456_v60  ;;  %v735_v2 = vmul.f32 9.0, %v461_v47  ;;  %v536_v15 = vrot.slane %v2277_v56, 4  ;;  %v548_v6 = vrot.slane %v2277_v56, 2  ;;  %v683_v24 = vrot.slane %v2423_v35, 2 }
 0x154   :  { %v2467_v33 = vpop.eup %1850  ;;  %v2470_v48 = vadd.f32 %v682_v42, %v653_v31  ;;  %v423_v34 = vrot.slane %v2262_v50, 7  ;;  %v450_v1 = vrot.slane %v2262_v50, 5  ;;  %v754_v45 = vsub.f32 %v736_v16, %v718_v61 }
 0x155   :  { %v2474_v43 = vpop.eup %1852  ;;  %v753_v32 = vsub.f32 %v735_v2, %v2409_v11  ;;  %v572_v53 = vsel %vm494_vm1, %v511_v36, %v536_v15  ;;  %v481_v14 = vrot.slane %v2281_v0, 2  ;;  %v722_v3 = vadd.f32 %v683_v24, %v655_v46 }
 0x156   :  { %v2479_v56 = vpop.eup %1854  ;;  %v2482_v58 = vsel %vm573_vm2, %v572_v53, %v548_v6  ;;  %v468_v35 = vsel %vm409_vm3, %v423_v34, %v450_v1  ;;  %v510_v42 = vrot.slane %v2281_v0, 6  ;;  %1860 = vtanh.f32 %v755_v23 }
 0x157   :  { %v2486_v50 = vpop.eup %1856  ;;  %v621_v25 = vrot.slane %v2482_v58, 1  ;;  %1862 = vtanh.f32 %v753_v32  ;;  %v740_v47 = vmul.f32 9.0, %v468_v35  ;;  %v560_v2 = vsel %vm409_vm3, %v481_v14, %v2281_v0 }
 0x158   :  { %v512_v61 = vsel %vm494_vm1, %v510_v42, %v511_v36  ;;  %v688_v46 = vrot.slane %v2482_v58, 2  ;;  %v566_v16 = vsel %vm494_vm1, %v560_v2, %v510_v42  ;;  %v395_v17 = vrot.slane %v2271_v55, 1 }
 0x159   :  { %v619_v15 = vrot.slane %v512_v61, 1  ;;  %v686_v6 = vrot.slane %v512_v61, 2  ;;  %v2496_v1 = vpop.eup %1858  ;;  %v758_v53 = vsub.f32 %v740_v47, %v722_v3  ;;  %v618_v11 = vrot.slane %v566_v16, 1 }
 0x15a   :  { %v685_v23 = vrot.slane %v566_v16, 2  ;;  %1864 = vtanh.f32 %v754_v45  ;;  %v422_v36 = vrot.slane %v2271_v55, 7  ;;  %v684_v0 = vsel %vm659_vm5, %v681_v37, %v683_v24 }
 0x15b   :  { %v622_v32 = vsel %vm592_vm4, %v619_v15, %v621_v25  ;;  %v658_v14 = vadd.f32 %v621_v25, %v2482_v58  ;;  %v620_v35 = vsel %vm592_vm4, %v618_v11, %v619_v15  ;;  %v1205_v2 = vrot.slane %v2298_v18, 6 }
 0x15c   :  { %v657_v42 = vadd.f32 %v622_v32, %v512_v61  ;;  %v656_v31 = vadd.f32 %v620_v35, %v566_v16  ;;  %v687_v3 = vsel %vm659_vm5, %v685_v23, %v686_v6  ;;  %v424_v47 = vsel %vm409_vm3, %v422_v36, %v423_v34 }
 0x15d   :  { %v462_v45 = vsel %vm409_vm3, %v395_v17, %v422_v36  ;;  %v2508_v38 = vadd.f32 %v684_v0, %v654_v41  ;;  %v2512_v55 = vmul.f32 9.0, %v424_v47  ;;  %v1240_v37 = vrot.slane %v2298_v18, 4 }
 0x15e   :  { %v2510_v60 = vmul.f32 9.0, %v462_v45  ;;  %v2515_v24 = vadd.f32 %v687_v3, %v656_v31  ;;  %v1252_v58 = vrot.slane %v2298_v18, 2  ;;  %v426_v11 = vrot.slane %v2289_v5, 7 }
 0x15f   :  { %v451_v25 = vrot.slane %v2289_v5, 5  ;;  %v757_v17 = vsub.f32 %v2512_v55, %v2508_v38  ;;  %v1276_v41 = vsel %vm494_vm1, %v1205_v2, %v1240_v37  ;;  %v2525_v61 = vadd.f32 %v688_v46, %v658_v14 }
 0x160   :  { %v756_v34 = vsub.f32 %v2510_v60, %v2470_v48  ;;  %v2527_v16 = vpop.eup %1860  ;;  %v2530_v31 = vsel %vm573_vm2, %v1276_v41, %v1252_v58  ;;  %v1186_v15 = vrot.slane %v2304_v22, 2  ;;  %v1204_v5 = vrot.slane %v2304_v22, 6 }
 0x161   :  { %v469_v18 = vsel %vm409_vm3, %v426_v11, %v451_v25  ;;  %v2535_v23 = vpop.eup %1862  ;;  %v1303_v48 = vrot.slane %v2530_v31, 1  ;;  %1866 = vtanh.f32 %v758_v53  ;;  %v396_v58 = vrot.slane %v2293_v7, 1 }
 0x162   :  { %v2542_v0 = vmul.f32 9.0, %v469_v18  ;;  %v2545_v14 = vsel %vm494_vm1, %v1204_v5, %v1205_v2  ;;  %v1264_v35 = vsel %vm409_vm3, %v1186_v15, %v2304_v22  ;;  %v425_v2 = vrot.slane %v2293_v7, 7 }
 0x163   :  { %v1301_v3 = vrot.slane %v2545_v14, 1  ;;  %v1367_v47 = vrot.slane %v2545_v14, 2  ;;  %v1270_v37 = vsel %vm494_vm1, %v1264_v35, %v1204_v5  ;;  %v689_v22 = vsel %vm659_vm5, %v686_v6, %v688_v46 }
 0x164   :  { %v2551_v45 = vpop.eup %1864  ;;  %v1300_v25 = vrot.slane %v1270_v37, 1  ;;  %v1366_v41 = vrot.slane %v1270_v37, 2  ;;  %v1350_v18 = vadd.f32 %v1303_v48, %v2530_v31  ;;  %v1369_v15 = vrot.slane %v2530_v31, 2 }
 0x165   :  { %v1304_v53 = vsel %vm592_vm4, %v1301_v3, %v1303_v48  ;;  %v427_v55 = vsel %vm409_vm3, %v425_v2, %v426_v11  ;;  %v463_v7 = vsel %vm409_vm3, %v396_v58, %v425_v2  ;;  %v2567_v32 = vadd.f32 %v689_v22, %v657_v42 }
 0x166   :  { %v1349_v36 = vadd.f32 %v1304_v53, %v2545_v14  ;;  %v1302_v5 = vsel %vm592_vm4, %v1300_v25, %v1301_v3  ;;  %v1368_v35 = vsel %vm659_vm5, %v1366_v41, %v1367_v47  ;;  %v2569_v60 = vmul.f32 9.0, %v463_v7 }
 0x167   :  { %2884 = vst [vmem:[#allocation17_spill] sm:$0xff] %v2567_v32  ;;  %v1348_v38 = vadd.f32 %v1302_v5, %v1270_v37  ;;  %v2571_v46 = vmul.f32 9.0, %v427_v55  ;;  %v1208_v6 = vrot.slane %v2329_v29, 6  ;;  %v1241_v31 = vrot.slane %v2329_v29, 4 }
 0x168   :  { %v1253_v48 = vrot.slane %v2329_v29, 2  ;;  %v1121_v11 = vrot.slane %v2313_v30, 7  ;;  %v1156_v14 = vrot.slane %v2313_v30, 5  ;;  %v1416_v58 = vadd.f32 %v1369_v15, %v1350_v18 }
 0x169   :  { %v1414_v3 = vadd.f32 %v1368_v35, %v1348_v38  ;;  %v1277_v55 = vsel %vm494_vm1, %v1208_v6, %v1241_v31  ;;  %v1187_v25 = vrot.slane %v2336_v49, 2  ;;  %v1207_v29 = vrot.slane %v2336_v49, 6 }
 0x16a   :  { %v1174_v2 = vsel %vm409_vm3, %v1121_v11, %v1156_v14  ;;  %v2589_v38 = vsel %vm573_vm2, %v1277_v55, %v1253_v48  ;;  %1868 = vtanh.f32 %v756_v34  ;;  %v1102_v37 = vrot.slane %v2322_v40, 1 }
 0x16b   :  { %v1434_v41 = vmul.f32 9.0, %v1174_v2  ;;  %v2591_v22 = vpop.eup %1866  ;;  %v1308_v35 = vrot.slane %v2589_v38, 1  ;;  %1870 = vtanh.f32 %v757_v17  ;;  %v1209_v31 = vsel %vm494_vm1, %v1207_v29, %v1208_v6 }
 0x16c   :  { %v1265_v14 = vsel %vm409_vm3, %v1187_v25, %v2336_v49  ;;  %v1306_v55 = vrot.slane %v1209_v31, 1  ;;  %v1372_v2 = vrot.slane %v1209_v31, 2  ;;  %v1120_v34 = vrot.slane %v2322_v40, 7 }
 0x16d   :  { %v1452_v7 = vsub.f32 %v1434_v41, %v1416_v58  ;;  %v1271_v48 = vsel %vm494_vm1, %v1265_v14, %v1207_v29  ;;  %v1353_v5 = vadd.f32 %v1308_v35, %v2589_v38  ;;  %v1370_v6 = vsel %vm659_vm5, %v1367_v47, %v1369_v15 }
 0x16e   :  { %v1305_v42 = vrot.slane %v1271_v48, 1  ;;  %v1371_v18 = vrot.slane %v1271_v48, 2  ;;  %v1309_v17 = vsel %vm592_vm4, %v1306_v55, %v1308_v35  ;;  %v1211_v58 = vrot.slane %v2357_v62, 6 }
 0x16f   :  { %1872 = vtanh.f32 %v1452_v7  ;;  %v1352_v25 = vadd.f32 %v1309_v17, %v1209_v31  ;;  %v1122_v41 = vsel %vm409_vm3, %v1120_v34, %v1121_v11  ;;  %v1168_v14 = vsel %vm409_vm3, %v1102_v37, %v1120_v34 }
 0x170   :  { %v1307_v49 = vsel %vm592_vm4, %v1305_v42, %v1306_v55  ;;  %v1373_v29 = vsel %vm659_vm5, %v1371_v18, %v1372_v2  ;;  %v1415_v30 = vadd.f32 %v1370_v6, %v1349_v36  ;;  %v1433_v40 = vmul.f32 9.0, %v1122_v41 }
 0x171   :  { %v1351_v7 = vadd.f32 %v1307_v49, %v1271_v48  ;;  %v1432_v53 = vmul.f32 9.0, %v1168_v14  ;;  %v1242_v32 = vrot.slane %v2357_v62, 4  ;;  %v1254_v35 = vrot.slane %v2357_v62, 2 }
 0x172   :  { %v1124_v47 = vrot.slane %v2345_v54, 7  ;;  %v1374_v15 = vrot.slane %v2589_v38, 2  ;;  %v1451_v31 = vsub.f32 %v1433_v40, %v1415_v30  ;;  %v1157_v18 = vrot.slane %v2345_v54, 5 }
 0x173   :  { %v2614_v42 = vadd.f32 %v1373_v29, %v1351_v7  ;;  %v1450_v11 = vsub.f32 %v1432_v53, %v1414_v3  ;;  %v1278_v37 = vsel %vm494_vm1, %v1211_v58, %v1242_v32  ;;  %v1188_v36 = vrot.slane %v2368_v10, 2 }
 0x174   :  { %v1210_v48 = vrot.slane %v2368_v10, 6  ;;  %v2620_v55 = vpop.eup %1868  ;;  %1874 = vtanh.f32 %v1451_v31  ;;  %v2623_v62 = vsel %vm573_vm2, %v1278_v37, %v1254_v35  ;;  %v1175_v38 = vsel %vm409_vm3, %v1124_v47, %v1157_v18 }
 0x175   :  { %v1419_v34 = vadd.f32 %v1374_v15, %v1353_v5  ;;  %v2626_v30 = vpop.eup %1870  ;;  %v794_v54 = vand.u32 2147483647, %v2591_v22  ;;  %1876 = vtanh.f32 %v1450_v11  ;;  %v1313_v32 = vrot.slane %v2623_v62, 1 }
 0x176   :  { %v1379_v3 = vrot.slane %v2623_v62, 2  ;;  %v1437_v53 = vmul.f32 9.0, %v1175_v38  ;;  %v2632_v17 = vsel %vm494_vm1, %v1210_v48, %v1211_v58  ;;  %v1266_v6 = vsel %vm409_vm3, %v1188_v36, %v2368_v10 }
 0x177   :  { %v1103_v49 = vrot.slane %v2351_v12, 1  ;;  %v1356_v5 = vadd.f32 %v1313_v32, %v2623_v62  ;;  %v1272_v41 = vsel %vm494_vm1, %v1266_v6, %v1210_v48  ;;  %v1311_v7 = vrot.slane %v2632_v17, 1 }
 0x178   :  { %v1377_v14 = vrot.slane %v2632_v17, 2  ;;  %v1455_v35 = vsub.f32 %v1437_v53, %v1419_v34  ;;  %v1310_v31 = vrot.slane %v1272_v41, 1  ;;  %v1376_v18 = vrot.slane %v1272_v41, 2 }
 0x179   :  { %v1873_v29 = vpop.eup %1872  ;;  %v1314_v58 = vsel %vm592_vm4, %v1311_v7, %v1313_v32  ;;  %v1123_v11 = vrot.slane %v2351_v12, 7  ;;  %v1375_v10 = vsel %vm659_vm5, %v1372_v2, %v1374_v15  ;;  %v1214_v37 = vrot.slane %v2383_v27, 6 }
 0x17a   :  { %v1488_v40 = vand.u32 2147483647, %v1873_v29  ;;  %v2885_v36 = vand.u32 2147483647, %v2359_v63  ;;  %1878 = vtanh.f32 %v1455_v35  ;;  %v1312_v48 = vsel %vm592_vm4, %v1310_v31, %v1311_v7 }
 0x17b   :  { %v2649_v6 = vadd.f32 %v1314_v58, %v2632_v17  ;;  %v1354_v34 = vadd.f32 %v1312_v48, %v1272_v41  ;;  %v1378_v32 = vsel %vm659_vm5, %v1376_v18, %v1377_v14  ;;  %v1125_v12 = vsel %vm409_vm3, %v1123_v11, %v1124_v47 }
 0x17c   :  { %v1506_v38 = vsub.f32 %v2885_v36, %v1488_v40  ;;  %v1169_v2 = vsel %vm409_vm3, %v1103_v49, %v1123_v11  ;;  %v1418_v53 = vadd.f32 %v1375_v10, %v1352_v25  ;;  %v1436_v29 = vmul.f32 9.0, %v1125_v12 }
 0x17d   :  { %v1435_v63 = vmul.f32 9.0, %v1169_v2  ;;  %v2656_v40 = vadd.f32 %v1378_v32, %v1354_v34  ;;  %v1243_v7 = vrot.slane %v2383_v27, 4  ;;  %v1255_v35 = vrot.slane %v2383_v27, 2 }
 0x17e   :  { %v1524_v15 = vand.u32 2147483647, %v1506_v38  ;;  %v1127_v41 = vrot.slane %v2373_v13, 7  ;;  %v1875_v31 = vpop.eup %1874  ;;  %v1454_v47 = vsub.f32 %v1436_v29, %v1418_v53  ;;  %v1158_v49 = vrot.slane %v2373_v13, 5 }
 0x17f   :  { %v1453_v18 = vsub.f32 %v1435_v63, %v2614_v42  ;;  %v1877_v11 = vpop.eup %1876  ;;  %v1487_v25 = vand.u32 2147483647, %v1875_v31  ;;  %v1279_v10 = vsel %vm494_vm1, %v1214_v37, %v1243_v7  ;;  %v1422_v36 = vadd.f32 %v1379_v3, %v1356_v5 }
 0x180   :  { %v1567_v58 = vsel %vm80_vm6, %v1524_v15, 0.0  ;;  %v1189_v38 = vrot.slane %v2397_v39, 2  ;;  %v1486_v27 = vand.u32 2147483647, %v1877_v11  ;;  %v2669_v48 = vsel %vm573_vm2, %v1279_v10, %v1255_v35 }
 0x181   :  { %1880 = vtanh.f32 %v1453_v18  ;;  %v1176_v34 = vsel %vm409_vm3, %v1127_v41, %v1158_v49  ;;  %v2886_v42 = vand.u32 2147483647, %v2420_v9  ;;  %v1318_v13 = vrot.slane %v2669_v48, 1 }
 0x182   :  { %1882 = vtanh.f32 %v1454_v47  ;;  %v1384_v12 = vrot.slane %v2669_v48, 2  ;;  %v2887_v2 = vand.u32 2147483647, %v2401_v21  ;;  %v1440_v15 = vmul.f32 9.0, %v1176_v34 }
 0x183   :  { %v1505_v32 = vsub.f32 %v2886_v42, %v1487_v25  ;;  %v1213_v53 = vrot.slane %v2397_v39, 6  ;;  %v1267_v63 = vsel %vm409_vm3, %v1189_v38, %v2397_v39  ;;  %v1359_v7 = vadd.f32 %v1318_v13, %v2669_v48 }
 0x184   :  { %v1504_v5 = vsub.f32 %v2887_v2, %v1486_v27  ;;  %v1104_v9 = vrot.slane %v2377_v19, 1  ;;  %v1126_v35 = vrot.slane %v2377_v19, 7  ;;  %v1879_v31 = vpop.eup %1878  ;;  %v1458_v47 = vsub.f32 %v1440_v15, %v1422_v36 }
 0x185   :  { %v1523_v29 = vand.u32 2147483647, %v1505_v32  ;;  %v2685_v49 = vsel %vm494_vm1, %v1213_v53, %v1214_v37  ;;  %v1273_v21 = vsel %vm494_vm1, %v1267_v63, %v1213_v53  ;;  %v1491_v25 = vand.u32 2147483647, %v1879_v31 }
 0x186   :  { %v1522_v18 = vand.u32 2147483647, %v1504_v5  ;;  %v1315_v10 = vrot.slane %v1273_v21, 1  ;;  %v1316_v39 = vrot.slane %v2685_v49, 1  ;;  %1884 = vtanh.f32 %v1458_v47 }
 0x187   :  { %v1555_v11 = vsel %vm77_vm7, %v1523_v29, 0.0  ;;  %v1381_v27 = vrot.slane %v1273_v21, 2  ;;  %v1382_v19 = vrot.slane %v2685_v49, 2  ;;  %v2888_v34 = vand.u32 2147483647, %v2433_v20 }
 0x188   :  { %v1544_v38 = vsel %vm77_vm7, %v1522_v18, 0.0  ;;  %v1317_v37 = vsel %vm592_vm4, %v1315_v10, %v1316_v39  ;;  %v1319_v42 = vsel %vm592_vm4, %v1316_v39, %v1318_v13  ;;  %v1128_v32 = vsel %vm409_vm3, %v1126_v35, %v1127_v41 }
 0x189   :  { %v1509_v36 = vsub.f32 %v2888_v34, %v1491_v25  ;;  %v1357_v2 = vadd.f32 %v1317_v37, %v1273_v21  ;;  %v2698_v5 = vadd.f32 %v1319_v42, %v2685_v49  ;;  %v1383_v15 = vsel %vm659_vm5, %v1381_v27, %v1382_v19 }
 0x18a   :  { %v1170_v53 = vsel %vm409_vm3, %v1104_v9, %v1126_v35  ;;  %v1380_v20 = vsel %vm659_vm5, %v1377_v14, %v1379_v3  ;;  %v1439_v29 = vmul.f32 9.0, %v1128_v32  ;;  %v1217_v47 = vrot.slane %v2413_v59, 6 }
 0x18b   :  { %v1527_v63 = vand.u32 2147483647, %v1509_v36  ;;  %v1438_v13 = vmul.f32 9.0, %v1170_v53  ;;  %v1881_v41 = vpop.eup %1880  ;;  %v2709_v31 = vadd.f32 %v1383_v15, %v1357_v2  ;;  %v1421_v18 = vadd.f32 %v1380_v20, %v2649_v6 }
 0x18c   :  { %v1244_v21 = vrot.slane %v2413_v59, 4  ;;  %v1883_v25 = vpop.eup %1882  ;;  %v1489_v35 = vand.u32 2147483647, %v1881_v41  ;;  %v1256_v17 = vrot.slane %v2413_v59, 2  ;;  %v2889_v27 = vand.u32 2147483647, %v2467_v33 }
 0x18d   :  { %v1568_v9 = vsel %vm80_vm6, %v1527_v63, 0.0  ;;  %v1456_v62 = vsub.f32 %v1438_v13, %v2656_v40  ;;  %v1490_v14 = vand.u32 2147483647, %v1883_v25  ;;  %v1457_v10 = vsub.f32 %v1439_v29, %v1421_v18 }
 0x18e   :  { %v1569_v3 = vadd.f32 %v1568_v9, %v1567_v58  ;;  %v1280_v39 = vsel %vm494_vm1, %v1217_v47, %v1244_v21  ;;  %v1507_v6 = vsub.f32 %v2889_v27, %v1489_v35  ;;  %v1130_v36 = vrot.slane %v2399_v52, 7 }
 0x18f   :  { %1886 = vtanh.f32 %v1456_v62  ;;  %v2721_v34 = vsel %vm573_vm2, %v1280_v39, %v1256_v17  ;;  %v2890_v37 = vand.u32 2147483647, %v2474_v43  ;;  %v1159_v32 = vrot.slane %v2399_v52, 5 }
 0x190   :  { %1888 = vtanh.f32 %v1457_v10  ;;  %v1323_v59 = vrot.slane %v2721_v34, 1  ;;  %v1389_v40 = vrot.slane %v2721_v34, 2  ;;  %v1525_v58 = vand.u32 2147483647, %v1507_v6  ;;  %v1885_v15 = vpop.eup %1884 }
 0x191   :  { %v1508_v42 = vsub.f32 %v2890_v37, %v1490_v14  ;;  %v1425_v33 = vadd.f32 %v1384_v12, %v1359_v7  ;;  %v1190_v2 = vrot.slane %v2418_v4, 2  ;;  %v1216_v43 = vrot.slane %v2418_v4, 6 }
 0x192   :  { %v1362_v63 = vadd.f32 %v1323_v59, %v2721_v34  ;;  %v1105_v20 = vrot.slane %v2407_v51, 1  ;;  %v1545_v13 = vsel %vm77_vm7, %v1525_v58, 0.0  ;;  %v1494_v29 = vand.u32 2147483647, %v1885_v15 }
 0x193   :  { %v1526_v53 = vand.u32 2147483647, %v1508_v42  ;;  %v1177_v41 = vsel %vm409_vm3, %v1130_v36, %v1159_v32  ;;  %v1268_v52 = vsel %vm409_vm3, %v1190_v2, %v2418_v4  ;;  %v1546_v18 = vadd.f32 %v1545_v13, %v1544_v38 }
 0x194   :  { %v1443_v21 = vmul.f32 9.0, %v1177_v41  ;;  %v2741_v25 = vsel %vm494_vm1, %v1216_v43, %v1217_v47  ;;  %v2891_v35 = vand.u32 2147483647, %v2479_v56  ;;  %v1274_v17 = vsel %vm494_vm1, %v1268_v52, %v1216_v43 }
 0x195   :  { %v1556_v7 = vsel %vm77_vm7, %v1526_v53, 0.0  ;;  %v1321_v14 = vrot.slane %v2741_v25, 1  ;;  %v1320_v39 = vrot.slane %v1274_v17, 1  ;;  %v1386_v27 = vrot.slane %v1274_v17, 2 }
 0x196   :  { %v1557_v9 = vadd.f32 %v1556_v7, %v1555_v11  ;;  %v1512_v62 = vsub.f32 %v2891_v35, %v1494_v29  ;;  %v1461_v10 = vsub.f32 %v1443_v21, %v1425_v33  ;;  %v1387_v4 = vrot.slane %v2741_v25, 2 }
 0x197   :  { %v1324_v6 = vsel %vm592_vm4, %v1321_v14, %v1323_v59  ;;  %v1129_v37 = vrot.slane %v2407_v51, 7  ;;  %v1385_v56 = vsel %vm659_vm5, %v1382_v19, %v1384_v12  ;;  %v1322_v11 = vsel %vm592_vm4, %v1320_v39, %v1321_v14 }
 0x198   :  { %v1530_v38 = vand.u32 2147483647, %v1512_v62  ;;  %1890 = vtanh.f32 %v1461_v10  ;;  %v2757_v47 = vadd.f32 %v1324_v6, %v2741_v25  ;;  %v1388_v42 = vsel %vm659_vm5, %v1386_v27, %v1387_v4 }
 0x199   :  { %v1887_v58 = vpop.eup %1886  ;;  %v1360_v51 = vadd.f32 %v1322_v11, %v1274_v17  ;;  %v1131_v48 = vsel %vm409_vm3, %v1129_v37, %v1130_v36  ;;  %v1171_v49 = vsel %vm409_vm3, %v1105_v20, %v1129_v37  ;;  %v1424_v33 = vadd.f32 %v1385_v56, %v2698_v5 }
 0x19a   :  { %v1570_v59 = vsel %vm80_vm6, %v1530_v38, 0.0  ;;  %v1889_v32 = vpop.eup %1888  ;;  %v1492_v19 = vand.u32 2147483647, %v1887_v58  ;;  %v1441_v2 = vmul.f32 9.0, %v1171_v49  ;;  %v1442_v43 = vmul.f32 9.0, %v1131_v48 }
 0x19b   :  { %v2765_v12 = vadd.f32 %v1570_v59, %v1569_v3  ;;  %v1493_v15 = vand.u32 2147483647, %v1889_v32  ;;  %v2768_v53 = vadd.f32 %v1388_v42, %v1360_v51  ;;  %v1220_v13 = vrot.slane %v2440_v28, 6 }
 0x19c   :  { %v2892_v29 = vand.u32 2147483647, %v2486_v50  ;;  %v1459_v36 = vsub.f32 %v1441_v2, %v2709_v31  ;;  %v1245_v20 = vrot.slane %v2440_v28, 4  ;;  %v1257_v3 = vrot.slane %v2440_v28, 2 }
 0x19d   :  { %v2893_v52 = vand.u32 2147483647, %v2496_v1  ;;  %v1460_v5 = vsub.f32 %v1442_v43, %v1424_v33  ;;  %v1133_v21 = vrot.slane %v2426_v44, 7  ;;  %v1160_v35 = vrot.slane %v2426_v44, 5 }
 0x19e   :  { %v1510_v41 = vsub.f32 %v2892_v29, %v1492_v19  ;;  %1892 = vtanh.f32 %v1459_v36  ;;  %v1281_v17 = vsel %vm494_vm1, %v1220_v13, %v1245_v20  ;;  %v1428_v50 = vadd.f32 %v1389_v40, %v1362_v63 }
 0x19f   :  { %v1511_v7 = vsub.f32 %v2893_v52, %v1493_v15  ;;  %1894 = vtanh.f32 %v1460_v5  ;;  %v2784_v14 = vsel %vm573_vm2, %v1281_v17, %v1257_v3  ;;  %v1178_v28 = vsel %vm409_vm3, %v1133_v21, %v1160_v35 }
 0x1a0   :  { %v1528_v62 = vand.u32 2147483647, %v1510_v41  ;;  %v1328_v10 = vrot.slane %v2784_v14, 1  ;;  %v1394_v44 = vrot.slane %v2784_v14, 2  ;;  %v1446_v39 = vmul.f32 9.0, %v1178_v28 }
 0x1a1   :  { %v1529_v31 = vand.u32 2147483647, %v1511_v7  ;;  %v1191_v63 = vrot.slane %v2446_v8, 2  ;;  %v1219_v6 = vrot.slane %v2446_v8, 6  ;;  %v1106_v58 = vrot.slane %v2431_v26, 1 }
 0x1a2   :  { %v1547_v1 = vsel %vm77_vm7, %v1528_v62, 0.0  ;;  %v1891_v37 = vpop.eup %1890  ;;  %v1365_v11 = vadd.f32 %v1328_v10, %v2784_v14  ;;  %v1464_v42 = vsub.f32 %v1446_v39, %v1428_v50  ;;  %v1132_v48 = vrot.slane %v2431_v26, 7 }
 0x1a3   :  { %v2790_v27 = vadd.f32 %v1547_v1, %v1546_v18  ;;  %v1558_v38 = vsel %vm77_vm7, %v1529_v31, 0.0  ;;  %v1497_v59 = vand.u32 2147483647, %v1891_v37  ;;  %v1221_v51 = vsel %vm494_vm1, %v1219_v6, %v1220_v13 }
 0x1a4   :  { %v2795_v56 = vadd.f32 %v1558_v38, %v1557_v9  ;;  %v1269_v18 = vsel %vm409_vm3, %v1191_v63, %v2446_v8  ;;  %1896 = vtanh.f32 %v1464_v42  ;;  %v1326_v32 = vrot.slane %v1221_v51, 1  ;;  %v2897_v63 = vld [vmem:[#allocation16_spill] sm:$0xff] }
 0x1a5   :  { %v1275_v49 = vsel %vm494_vm1, %v1269_v18, %v1219_v6  ;;  %v1392_v19 = vrot.slane %v1221_v51, 2  ;;  %v2894_v9 = vand.u32 2147483647, %v2527_v16  ;;  %v1134_v43 = vsel %vm409_vm3, %v1132_v48, %v1133_v21 }
 0x1a6   :  { %v1325_v2 = vrot.slane %v1275_v49, 1  ;;  %v1391_v15 = vrot.slane %v1275_v49, 2  ;;  %v1329_v29 = vsel %vm592_vm4, %v1326_v32, %v1328_v10  ;;  %v1172_v13 = vsel %vm409_vm3, %v1106_v58, %v1132_v48 }
 0x1a7   :  { %v1515_v33 = vsub.f32 %v2894_v9, %v1497_v59  ;;  %v1390_v26 = vsel %vm659_vm5, %v1387_v4, %v1389_v40  ;;  %v1445_v8 = vmul.f32 9.0, %v1134_v43  ;;  %v1364_v16 = vadd.f32 %v1329_v29, %v1221_v51 }
 0x1a8   :  { %v1327_v36 = vsel %vm592_vm4, %v1325_v2, %v1326_v32  ;;  %v1393_v20 = vsel %vm659_vm5, %v1391_v15, %v1392_v19  ;;  %v1893_v3 = vpop.eup %1892  ;;  %v1427_v7 = vadd.f32 %v1390_v26, %v2757_v47  ;;  %v1444_v5 = vmul.f32 9.0, %v1172_v13  ;;  %v2900_v2 = vld [vmem:[#allocation17_spill] sm:$0xff] }
 0x1a9   :  { %v1533_v41 = vand.u32 2147483647, %v1515_v33  ;;  %v1363_v52 = vadd.f32 %v1327_v36, %v1275_v49  ;;  %v1895_v21 = vpop.eup %1894  ;;  %v1495_v34 = vand.u32 2147483647, %v1893_v3  ;;  %v2038_v62 = vmov 0.0  }
 0x1aa   :  { %81 = vst.msk [vmem:[#allocation2 + $0x10] sm:$0x3] %vm80_vm6, %v2038_v62  ;;  %v1136_v40 = vrot.slane %v2449_v57, 7  ;;  %v1161_v25 = vrot.slane %v2449_v57, 5  ;;  %v1496_v17 = vand.u32 2147483647, %v1895_v21  ;;  %v1462_v50 = vsub.f32 %v1444_v5, %v2768_v53 }
 0x1ab   :  { %v1572_v35 = vsel %vm80_vm6, %v1533_v41, 0.0  ;;  %78 = vst.msk [vmem:[#allocation2] sm:$0xff] %vm77_vm7, %v2038_v62  ;;  %79 = vst.msk [vmem:[#allocation2 + $0x8] sm:$0xff] %vm77_vm7, %v2038_v62  ;;  %v1429_v47 = vadd.f32 %v1393_v20, %v1363_v52  ;;  %v2895_v31 = vand.u32 2147483647, %v2535_v23  ;;  %v1463_v28 = vsub.f32 %v1445_v8, %v1427_v7 }
 0x1ac   :  { %v1573_v4 = vadd.f32 %v1572_v35, %v2765_v12  ;;  %v1179_v1 = vsel %vm409_vm3, %v1136_v40, %v1161_v25  ;;  %v1431_v10 = vadd.f32 %v1394_v44, %v1365_v11  ;;  %v2896_v39 = vand.u32 2147483647, %v2551_v45 }
 0x1ad   :  { %v1513_v14 = vsub.f32 %v2895_v31, %v1495_v34  ;;  %1898 = vtanh.f32 %v1462_v50  ;;  %v1449_v38 = vmul.f32 9.0, %v1179_v1  ;;  %v1107_v6 = vrot.slane %v2897_v63, 1 }
 0x1ae   :  { %v1514_v57 = vsub.f32 %v2896_v39, %v1496_v17  ;;  %1900 = vtanh.f32 %v1463_v28  ;;  %v1135_v12 = vrot.slane %v2897_v63, 7  ;;  %v1395_v53 = vsel %vm659_vm5, %v1392_v19, %v1394_v44  ;;  %v1897_v42 = vpop.eup %1896 }
 0x1af   :  { %v1531_v37 = vand.u32 2147483647, %v1513_v14  ;;  %v2898_v23 = vsub.f32 %v2542_v0, %v2525_v61  ;;  %v1467_v11 = vsub.f32 %v1449_v38, %v1431_v10  ;;  %v1430_v59 = vadd.f32 %v1395_v53, %v1364_v16 }
 0x1b0   :  { %v1532_v58 = vand.u32 2147483647, %v1514_v57  ;;  %v1500_v51 = vand.u32 2147483647, %v1897_v42  ;;  %v1137_v18 = vsel %vm409_vm3, %v1135_v12, %v1136_v40  ;;  %v1173_v48 = vsel %vm409_vm3, %v1107_v6, %v1135_v12 }
 0x1b1   :  { %1902 = vtanh.f32 %v2898_v23  ;;  %v1549_v45 = vsel %vm77_vm7, %v1531_v37, 0.0  ;;  %v1447_v44 = vmul.f32 9.0, %v1173_v48  ;;  %v1448_v0 = vmul.f32 9.0, %v1137_v18  ;;  %v1542_v31 = vld [vmem:[#allocation2 + $0x10] sm:$0x3] }
 0x1b2   :  { %v1550_v49 = vadd.f32 %v1549_v45, %v2790_v27  ;;  %v1560_v32 = vsel %vm77_vm7, %v1532_v58, 0.0  ;;  %1904 = vtanh.f32 %v1467_v11  ;;  %v1518_v61 = vsub.f32 %v794_v54, %v1500_v51  ;;  %v1540_v63 = vld [vmem:[#allocation2] sm:$0xff]  ;;  %v1541_v37 = vld [vmem:[#allocation2 + $0x8] sm:$0xff] }
 0x1b3   :  { %v1561_v19 = vadd.f32 %v1560_v32, %v2795_v56  ;;  %v2899_v9 = vsub.f32 %v2569_v60, %v2515_v24  ;;  %v1465_v33 = vsub.f32 %v1447_v44, %v1429_v47  ;;  %v2901_v15 = vsub.f32 %v2571_v46, %v2900_v2 }
 0x1b4   :  { %v1536_v27 = vand.u32 2147483647, %v1518_v61  ;;  %v1466_v43 = vsub.f32 %v1448_v0, %v1430_v59  ;;  %v792_v54 = vand.u32 2147483647, %v2620_v55  ;;  %v793_v24 = vand.u32 2147483647, %v2626_v30 }
 0x1b5   :  { %1906 = vtanh.f32 %v2899_v9 }
 0x1b6   :  { %1908 = vtanh.f32 %v2901_v15  ;;  %v1574_v29 = vsel %vm80_vm6, %v1536_v27, 0.0 }
 0x1b7   :  { %1910 = vtanh.f32 %v1465_v33  ;;  %v1899_v56 = vpop.eup %1898  ;;  %v1575_v13 = vadd.f32 %v1574_v29, %v1573_v4 }
 0x1b8   :  { %1912 = vtanh.f32 %v1466_v43  ;;  %v1901_v22 = vpop.eup %1900  ;;  %v1498_v26 = vand.u32 2147483647, %v1899_v56 }
 0x1b9   :  { %v1499_v60 = vand.u32 2147483647, %v1901_v22 }
 0x1ba   :  { %v1516_v41 = vsub.f32 %v792_v54, %v1498_v26 }
 0x1bb   :  { %v1903_v8 = vpop.eup %1902  ;;  %v1517_v46 = vsub.f32 %v793_v24, %v1499_v60 }
 0x1bc   :  { %v1905_v36 = vpop.eup %1904  ;;  %v797_v16 = vand.u32 2147483647, %v1903_v8  ;;  %v1534_v20 = vand.u32 2147483647, %v1516_v41 }
 0x1bd   :  { %v1503_v3 = vand.u32 2147483647, %v1905_v36  ;;  %v1535_v7 = vand.u32 2147483647, %v1517_v46 }
 0x1be   :  { %v1551_v21 = vsel %vm77_vm7, %v1534_v20, 0.0 }
 0x1bf   :  { %v1907_v52 = vpop.eup %1906  ;;  %v1521_v35 = vsub.f32 %v797_v16, %v1503_v3  ;;  %v1552_v62 = vadd.f32 %v1551_v21, %v1550_v49  ;;  %v1562_v55 = vsel %vm77_vm7, %v1535_v7, 0.0 }
 0x1c0   :  { %v1909_v5 = vpop.eup %1908  ;;  %v795_v25 = vand.u32 2147483647, %v1907_v52  ;;  %v1563_v30 = vadd.f32 %v1562_v55, %v1561_v19 }
 0x1c1   :  { %v1911_v34 = vpop.eup %1910  ;;  %v1539_v4 = vand.u32 2147483647, %v1521_v35  ;;  %v796_v47 = vand.u32 2147483647, %v1909_v5 }
 0x1c2   :  { %v1913_v40 = vpop.eup %1912  ;;  %v1501_v17 = vand.u32 2147483647, %v1911_v34 }
 0x1c3   :  { %v1502_v50 = vand.u32 2147483647, %v1913_v40  ;;  %v1576_v14 = vsel %vm80_vm6, %v1539_v4, 0.0 }
 0x1c4   :  { %v1519_v28 = vsub.f32 %v795_v25, %v1501_v17  ;;  %v1577_v1 = vadd.f32 %v1576_v14, %v1575_v13 }
 0x1c5   :  { %v1520_v10 = vsub.f32 %v796_v47, %v1502_v50 }
 0x1c6   :  { %v1537_v39 = vand.u32 2147483647, %v1519_v28  ;;  %v1580_v57 = vadd.f32 %v1577_v1, %v1542_v31 }
 0x1c7   :  { %v1538_v38 = vand.u32 2147483647, %v1520_v10 }
 0x1c8   :  { %v1553_v6 = vsel %vm77_vm7, %v1537_v39, 0.0  ;;  %1583 = vst.msk [vmem:[#allocation2 + $0x10] sm:$0x3] %vm80_vm6, %v1580_v57 }
 0x1c9   :  { %v1554_v12 = vadd.f32 %v1553_v6, %v1552_v62  ;;  %v1564_v53 = vsel %vm77_vm7, %v1538_v38, 0.0 }
 0x1ca   :  { %v1565_v42 = vadd.f32 %v1564_v53, %v1563_v30 }
 0x1cb   :  { %v1578_v23 = vadd.f32 %v1554_v12, %v1540_v63 }
 0x1cc   :  { %v1579_v58 = vadd.f32 %v1565_v42, %v1541_v37 }
 0x1cd   :  { %1581 = vst.msk [vmem:[#allocation2] sm:$0xff] %vm77_vm7, %v1578_v23 }
 0x1ce   :  { %1582 = vst.msk [vmem:[#allocation2 + $0x8] sm:$0xff] %vm77_vm7, %v1579_v58 }
 0x1cf   :  { %v1589_v45 = vld [vmem:[#allocation2 + $0x10] sm:$0x3] }
 0x1d0   :  { %v1593_v49 = vsel %vm80_vm6, %v1589_v45, 0.0 }
 0x1d4   :  { %v1587_v11 = vld [vmem:[#allocation2] sm:$0xff] }
 0x1d5   :  { %v1588_v59 = vld [vmem:[#allocation2 + $0x8] sm:$0xff]  ;;  %v1590_v51 = vsel %vm77_vm7, %v1587_v11, 0.0 }
 0x1d6   :  { %v1591_v18 = vsel %vm77_vm7, %v1588_v59, 0.0 }
 0x1d7   :  { %v1592_v48 = vadd.f32 %v1591_v18, %v1590_v51 }
 0x1d9   :  { %v1594_v32 = vadd.f32 %v1593_v49, %v1592_v48 }
 0x1db   :  { %1595 = vadd.xlane.f32.xlu0 %v1594_v32 }
 0x268   :  { %v1596_v44 = vpop.xlane.xlu0 %1595 }
 0x269   :  { %v1597_v19 = vrot.slane %v1596_v44, 4 }
 0x26b   :  { %v1598_v61 = vadd.f32 %v1597_v19, %v1596_v44 }
 0x26d   :  { %v1599_v0 = vrot.slane %v1598_v61, 2 }
 0x26f   :  { %v1600_v9 = vadd.f32 %v1599_v0, %v1598_v61 }
 0x271   :  { %v1601_v33 = vrot.slane %v1600_v9, 1 }
 0x273   :  { %v1602_v2 = vadd.f32 %v1601_v33, %v1600_v9 }
 0x275   :  { %1832 = vpush %v1602_v2 }
 0x2a6   :  { %s1833_s28 = spop %1832 }
 0x2a7   :  { %v1604_v15 = vstv %s1833_s28 }
 0x2a8   :  { %1606 = vst.msk [vmem:[#allocation11] sm:$0x1] %vm1605_vm8, %v1604_v15 }
 0x2a9   :  { %2013 = shalt.err (!%p2010_p8)
}
 0x2aa   :  { %s2014_s15 = scalar_lea.hbm %s2880_s4, 16 }
 0x2ab   :  { %p2015_p9 = scmp.ne.s32.totalorder %s2880_s4, %s2014_s15  ;;  %p2018_p10 = scmp.lt.u32.totalorder %s2014_s15, %s2880_s4 }
 0x2ad   :  { %p2020_p11 = pnand %p2018_p10, %p2015_p9 }
 0x2af   :  { %2023 = shalt.err (!%p2020_p11)
}
 0x2b0   :  { %1616 = dma.vmem_to_hbm [thread:$0]  %s1614_s27, 16, %s2880_s4, [#allocation5]  }
 0x2b1   :  { %2030 = dma.done.wait [#allocation5], 16  }
 0x2b2   :  { %2031 = vsyncadd [#allocation5], 4294967280 }
 0x2b3   :  { %1620 = vsyncpa [#allocation4], 1 }
 0x2b4   :  { %1621 = vsyncpa [#allocation7], 1 }
 0x2b5   :  { %1622 = vsyncpa [#allocation10], 1 }
 0x2b6   :  { %1623 = vsyncpa [#allocation5], 1 }

</bundles_post_ra>
